<compile_context>
chip_gen: v7x
topology: tpu7x:2x2x1
jax: 0.10.0
libtpu: 0.0.40
codegen_flags: <defaults>
</compile_context>

<pallas_src>
import jax
import jax.numpy as jnp
import numpy as np
from jax import lax
from jax.experimental import pallas as pl
from jax.experimental.pallas import tpu as pltpu

# ---- module config (synthetic, mirrors __init__ shape derivation) -----------
PATTERNSIZE = 16
NBADDNEURONS = 15
NBNEUR = PATTERNSIZE + NBADDNEURONS + 1  # = 32

_UNROLL_LIMIT = 32  # fully unroll the time loop at trace time up to this T


# ---- Pallas kernels -----------------------------------------------------------
def _plastic_kernel(eta_ref, x_ref, yin0_ref, w_ref, alpha_ref, hebb_in_ref,
                    yout_ref, hebb_out_ref):
    # Read eta from SMEM once; hoist (1 - eta) out of the time loop.
    eta = eta_ref[0]
    one_minus_eta = 1.0 - eta

    # hebb state lives in the (HBM-aliased) output VMEM buffer for all steps.
    hebb_out_ref[...] = hebb_in_ref[...]

    nsteps = x_ref.shape[0]

    def step(t, y_row):
        # y_row: (1, Np) current recurrent state (yin of this step).
        hebb = hebb_out_ref[...]                                  # (Np, Np)
        w_eff = w_ref[...] + alpha_ref[...] * hebb                # VPU elementwise

        # yout = tanh(yin @ w_eff + x_t): one MXU pass + EUP tanh.
        pre = jnp.dot(y_row, w_eff, preferred_element_type=jnp.float32) + x_ref[t]
        y_out = jnp.tanh(pre)                                     # (1, Np)
        yout_ref[t] = y_out                                       # lane-dense store

        # Hebbian update: outer product on the VPU via broadcast multiply
        # (no second MXU pass): outer[i, j] = yin[i] * yout[j].
        y_col = jnp.transpose(y_row)                              # (Np, 1)
        hebb_out_ref[...] = one_minus_eta * hebb + eta * (y_col * y_out)

        return y_out                                              # next yin

    if nsteps <= _UNROLL_LIMIT:
        y = yin0_ref[...]
        for t in range(nsteps):                                   # static indices
            y = step(t, y)
    else:
        lax.fori_loop(0, nsteps, step, yin0_ref[...])


def _nonplastic_kernel(x_ref, yin0_ref, w_ref, yout_ref):
    nsteps = x_ref.shape[0]
    w = w_ref[...]                                                # loop-invariant

    def step(t, y_row):
        pre = jnp.dot(y_row, w, preferred_element_type=jnp.float32) + x_ref[t]
        y_out = jnp.tanh(pre)
        yout_ref[t] = y_out
        return y_out

    if nsteps <= _UNROLL_LIMIT:
        y = yin0_ref[...]
        for t in range(nsteps):
            y = step(t, y)
    else:
        lax.fori_loop(0, nsteps, step, yin0_ref[...])


# ---- wrappers ------------------------------------------------------------------
def _lane_pad(n):
    return max(128, ((n + 127) // 128) * 128)


@jax.jit
def network_forward_seq(x_seq, yin0, hebb, w, alpha, eta):
    """Run T recurrent steps of the plastic NETWORK.forward in one pallas_call.

    x_seq: (T, 1, N) per-step inputs;  yin0: (1, N) initial state;
    hebb/w/alpha: (N, N);  eta: (1,).  All float32.
    Returns (yout_seq (T, 1, N), hebb_final (N, N)).
    """
    T, _, n = x_seq.shape
    npad = _lane_pad(n)                         # lane-dense feature dim
    dp = npad - n

    x_p = jnp.pad(x_seq, ((0, 0), (0, 0), (0, dp)))
    y0_p = jnp.pad(yin0, ((0, 0), (0, dp)))
    w_p = jnp.pad(w, ((0, dp), (0, dp)))
    a_p = jnp.pad(alpha, ((0, dp), (0, dp)))
    h_p = jnp.pad(hebb, ((0, dp), (0, dp)))

    vec_spec = pl.BlockSpec((1, npad), lambda: (0, 0))
    mat_spec = pl.BlockSpec((npad, npad), lambda: (0, 0))
    seq_spec = pl.BlockSpec((T, 1, npad), lambda: (0, 0, 0))
    smem_spec = pl.BlockSpec(memory_space=pltpu.MemorySpace.SMEM)

    yout_p, hebb_p = pl.pallas_call(
        _plastic_kernel,
        out_shape=(
            jax.ShapeDtypeStruct((T, 1, npad), jnp.float32),
            jax.ShapeDtypeStruct((npad, npad), jnp.float32),
        ),
        in_specs=[smem_spec, seq_spec, vec_spec, mat_spec, mat_spec, mat_spec],
        out_specs=(seq_spec, mat_spec),
        input_output_aliases={5: 1},   # hebb input (arg 5) aliases hebb output (out 1)
    )(eta, x_p, y0_p, w_p, a_p, h_p)

    return yout_p[:, :, :n], hebb_p[:n, :n]


@jax.jit
def network_forward_seq_nonplastic(x_seq, yin0, w):
    """Run T recurrent steps of the nonplastic NETWORK.forward (hebb untouched)."""
    T, _, n = x_seq.shape
    npad = _lane_pad(n)
    dp = npad - n

    x_p = jnp.pad(x_seq, ((0, 0), (0, 0), (0, dp)))
    y0_p = jnp.pad(yin0, ((0, 0), (0, dp)))
    w_p = jnp.pad(w, ((0, dp), (0, dp)))

    vec_spec = pl.BlockSpec((1, npad), lambda: (0, 0))
    mat_spec = pl.BlockSpec((npad, npad), lambda: (0, 0))
    seq_spec = pl.BlockSpec((T, 1, npad), lambda: (0, 0, 0))

    yout_p = pl.pallas_call(
        _nonplastic_kernel,
        out_shape=jax.ShapeDtypeStruct((T, 1, npad), jnp.float32),
        in_specs=[seq_spec, vec_spec, mat_spec],
        out_specs=seq_spec,
    )(x_p, y0_p, w_p)

    return yout_p[:, :, :n]


# ---- pure-JAX references (module forward iterated per step) --------------------
def network_forward_ref(x_seq, yin0, hebb, w, alpha, eta):
    e = eta[0]
    y = yin0
    outs = []
    for t in range(x_seq.shape[0]):
        y_new = jnp.tanh(y @ (w + alpha * hebb) + x_seq[t])
        hebb = (1.0 - e) * hebb + e * (y.T @ y_new)
        outs.append(y_new)
        y = y_new
    return jnp.stack(outs, axis=0), hebb


def network_forward_ref_nonplastic(x_seq, yin0, w):
    y = yin0
    outs = []
    for t in range(x_seq.shape[0]):
        y = jnp.tanh(y @ w + x_seq[t])
        outs.append(y)
    return jnp.stack(outs, axis=0)


if __name__ == "__main__":
    key = jax.random.PRNGKey(0)
    k_w, k_a, k_x, k_y, k_h = jax.random.split(key, 5)

    T = 8  # number of recurrent steps processed by one kernel launch

    # Deterministic parameter init, mirroring the PyTorch __init__:
    #   w = 0.01*randn, alpha = 0.01*randn with zeroed diagonal, eta = 0.01.
    w = 0.01 * jax.random.normal(k_w, (NBNEUR, NBNEUR), dtype=jnp.float32)
    alpha = 0.01 * jax.random.normal(k_a, (NBNEUR, NBNEUR), dtype=jnp.float32)
    alpha = alpha - jnp.diag(jnp.diag(alpha))
    eta = 0.01 * jnp.ones((1,), dtype=jnp.float32)

    # Inputs: sequence of per-step row vectors, initial state, nonzero hebb
    # (initialZeroHebb would be zeros; nonzero exercises the plastic path).
    x_seq = jax.random.normal(k_x, (T, 1, NBNEUR), dtype=jnp.float32)
    yin0 = jax.random.normal(k_y, (1, NBNEUR), dtype=jnp.float32)
    hebb0 = 0.1 * jax.random.normal(k_h, (NBNEUR, NBNEUR), dtype=jnp.float32)

    # --- plastic path: multi-step run (time loop inside the kernel) -----------
    yout_seq, hebb_T = network_forward_seq(x_seq, yin0, hebb0, w, alpha, eta)
    jax.block_until_ready((yout_seq, hebb_T))

    yout_ref, hebb_ref = network_forward_ref(x_seq, yin0, hebb0, w, alpha, eta)
    assert yout_seq.shape == (T, 1, NBNEUR) and hebb_T.shape == (NBNEUR, NBNEUR)
    assert np.allclose(np.asarray(yout_seq), np.asarray(yout_ref), atol=1e-4, rtol=1e-4)
    assert np.allclose(np.asarray(hebb_T), np.asarray(hebb_ref), atol=1e-4, rtol=1e-4)

    # --- plastic path: single-step run == exact original module forward -------
    yout1, hebb1 = network_forward_seq(x_seq[:1], yin0, hebb0, w, alpha, eta)
    jax.block_until_ready((yout1, hebb1))
    yout1_ref = jnp.tanh(yin0 @ (w + alpha * hebb0) + x_seq[0])
    hebb1_ref = (1.0 - eta[0]) * hebb0 + eta[0] * (yin0.T @ yout1_ref)
    assert np.allclose(np.asarray(yout1[0]), np.asarray(yout1_ref), atol=1e-4, rtol=1e-4)
    assert np.allclose(np.asarray(hebb1), np.asarray(hebb1_ref), atol=1e-4, rtol=1e-4)

    # --- nonplastic path: yout = tanh(yin @ w + input), hebb untouched --------
    yout_np = network_forward_seq_nonplastic(x_seq, yin0, w)
    jax.block_until_ready(yout_np)
    yout_np_ref = network_forward_ref_nonplastic(x_seq, yin0, w)
    assert np.allclose(np.asarray(yout_np), np.asarray(yout_np_ref), atol=1e-4, rtol=1e-4)

    print("KERNEL_OK")
</pallas_src>

<mosaic_0001>
module attributes {stable_mosaic.version = 11 : i64} {
  func.func @_plastic_kernel(%arg0: memref<1xf32, #tpu.memory_space<smem>>, %arg1: memref<8x1x128xf32, #tpu.memory_space<vmem>>, %arg2: memref<1x128xf32, #tpu.memory_space<vmem>>, %arg3: memref<128x128xf32, #tpu.memory_space<vmem>>, %arg4: memref<128x128xf32, #tpu.memory_space<vmem>>, %arg5: memref<128x128xf32, #tpu.memory_space<vmem>>, %arg6: memref<8x1x128xf32, #tpu.memory_space<vmem>>, %arg7: memref<128x128xf32, #tpu.memory_space<vmem>>) attributes {dimension_semantics = [], scalar_prefetch = 0 : i64, scratch_operands = 0 : i64, tpu.core_type = #tpu.core_type<tc>} {
    %c0 = arith.constant 0 : index
    %0 = memref.load %arg0[%c0] : memref<1xf32, #tpu.memory_space<smem>>
    %cst = arith.constant 1.000000e+00 : f32
    %1 = arith.subf %cst, %0 : f32
    %c0_0 = arith.constant 0 : index
    %c0_1 = arith.constant 0 : index
    %2 = vector.load %arg5[%c0_0, %c0_1] : memref<128x128xf32, #tpu.memory_space<vmem>>, vector<128x128xf32>
    %c0_2 = arith.constant 0 : index
    %c0_3 = arith.constant 0 : index
    %3 = vector.load %arg7[%c0_2, %c0_3] : memref<128x128xf32, #tpu.memory_space<vmem>>, vector<128x128xf32>
    tpu.vector_store %arg7[%c0_2, %c0_3], %2 {strides = array<i32>} : memref<128x128xf32, #tpu.memory_space<vmem>>, vector<128x128xf32>,
    %c0_4 = arith.constant 0 : index
    %c0_5 = arith.constant 0 : index
    %4 = vector.load %arg2[%c0_4, %c0_5] : memref<1x128xf32, #tpu.memory_space<vmem>>, vector<1x128xf32>
    %c0_6 = arith.constant 0 : index
    %c0_7 = arith.constant 0 : index
    %5 = vector.load %arg7[%c0_6, %c0_7] : memref<128x128xf32, #tpu.memory_space<vmem>>, vector<128x128xf32>
    %c0_8 = arith.constant 0 : index
    %c0_9 = arith.constant 0 : index
    %6 = vector.load %arg3[%c0_8, %c0_9] : memref<128x128xf32, #tpu.memory_space<vmem>>, vector<128x128xf32>
    %c0_10 = arith.constant 0 : index
    %c0_11 = arith.constant 0 : index
    %7 = vector.load %arg4[%c0_10, %c0_11] : memref<128x128xf32, #tpu.memory_space<vmem>>, vector<128x128xf32>
    %8 = arith.mulf %7, %5 : vector<128x128xf32>
    %9 = arith.addf %6, %8 : vector<128x128xf32>
    %cst_12 = arith.constant dense<0.000000e+00> : vector<1x128xf32>
    %10 = tpu.matmul %4, %9, %cst_12 {dimension_numbers = #tpu.dot_dimension_numbers<[1], [0], [0], [1], [0, 0, 1, 1], [], []>} : vector<1x128xf32>, vector<128x128xf32>, vector<1x128xf32> -> vector<1x128xf32>
    %c0_13 = arith.constant 0 : index
    %c0_14 = arith.constant 0 : index
    %c0_15 = arith.constant 0 : index
    %11 = vector.load %arg1[%c0_13, %c0_14, %c0_15] : memref<8x1x128xf32, #tpu.memory_space<vmem>>, vector<1x1x128xf32>
    %12 = vector.shape_cast %11 : vector<1x1x128xf32> to vector<1x128xf32>
    %13 = arith.addf %10, %12 : vector<1x128xf32>
    %14 = math.tanh %13 : vector<1x128xf32>
    %c0_16 = arith.constant 0 : index
    %c0_17 = arith.constant 0 : index
    %c0_18 = arith.constant 0 : index
    %15 = vector.load %arg6[%c0_16, %c0_17, %c0_18] : memref<8x1x128xf32, #tpu.memory_space<vmem>>, vector<1x1x128xf32>
    %16 = vector.shape_cast %15 : vector<1x1x128xf32> to vector<1x128xf32>
    %17 = vector.shape_cast %14 : vector<1x128xf32> to vector<1x1x128xf32>
    tpu.vector_store %arg6[%c0_16, %c0_17, %c0_18], %17 {strides = array<i32>} : memref<8x1x128xf32, #tpu.memory_space<vmem>>, vector<1x1x128xf32>,
    %18 = tpu.transpose %4, [1, 0] : vector<1x128xf32> -> vector<128x1xf32>
    %19 = vector.broadcast %1 : f32 to vector<128x128xf32>
    %20 = arith.mulf %19, %5 : vector<128x128xf32>
    %21 = vector.broadcast %18 : vector<128x1xf32> to vector<128x128xf32>
    %22 = vector.broadcast %14 : vector<1x128xf32> to vector<128x128xf32>
    %23 = arith.mulf %21, %22 : vector<128x128xf32>
    %24 = vector.broadcast %0 : f32 to vector<128x128xf32>
    %25 = arith.mulf %24, %23 : vector<128x128xf32>
    %26 = arith.addf %20, %25 : vector<128x128xf32>
    %c0_19 = arith.constant 0 : index
    %c0_20 = arith.constant 0 : index
    %27 = vector.load %arg7[%c0_19, %c0_20] : memref<128x128xf32, #tpu.memory_space<vmem>>, vector<128x128xf32>
    tpu.vector_store %arg7[%c0_19, %c0_20], %26 {strides = array<i32>} : memref<128x128xf32, #tpu.memory_space<vmem>>, vector<128x128xf32>,
    %c0_21 = arith.constant 0 : index
    %c0_22 = arith.constant 0 : index
    %28 = vector.load %arg7[%c0_21, %c0_22] : memref<128x128xf32, #tpu.memory_space<vmem>>, vector<128x128xf32>
    %c0_23 = arith.constant 0 : index
    %c0_24 = arith.constant 0 : index
    %29 = vector.load %arg3[%c0_23, %c0_24] : memref<128x128xf32, #tpu.memory_space<vmem>>, vector<128x128xf32>
    %c0_25 = arith.constant 0 : index
    %c0_26 = arith.constant 0 : index
    %30 = vector.load %arg4[%c0_25, %c0_26] : memref<128x128xf32, #tpu.memory_space<vmem>>, vector<128x128xf32>
    %31 = arith.mulf %30, %28 : vector<128x128xf32>
    %32 = arith.addf %29, %31 : vector<128x128xf32>
    %cst_27 = arith.constant dense<0.000000e+00> : vector<1x128xf32>
    %33 = tpu.matmul %14, %32, %cst_27 {dimension_numbers = #tpu.dot_dimension_numbers<[1], [0], [0], [1], [0, 0, 1, 1], [], []>} : vector<1x128xf32>, vector<128x128xf32>, vector<1x128xf32> -> vector<1x128xf32>
    %c1 = arith.constant 1 : index
    %c0_28 = arith.constant 0 : index
    %c0_29 = arith.constant 0 : index
    %34 = vector.load %arg1[%c1, %c0_28, %c0_29] : memref<8x1x128xf32, #tpu.memory_space<vmem>>, vector<1x1x128xf32>
    %35 = vector.shape_cast %34 : vector<1x1x128xf32> to vector<1x128xf32>
    %36 = arith.addf %33, %35 : vector<1x128xf32>
    %37 = math.tanh %36 : vector<1x128xf32>
    %c1_30 = arith.constant 1 : index
    %c0_31 = arith.constant 0 : index
    %c0_32 = arith.constant 0 : index
    %38 = vector.load %arg6[%c1_30, %c0_31, %c0_32] : memref<8x1x128xf32, #tpu.memory_space<vmem>>, vector<1x1x128xf32>
    %39 = vector.shape_cast %38 : vector<1x1x128xf32> to vector<1x128xf32>
    %40 = vector.shape_cast %37 : vector<1x128xf32> to vector<1x1x128xf32>
    tpu.vector_store %arg6[%c1_30, %c0_31, %c0_32], %40 {strides = array<i32>} : memref<8x1x128xf32, #tpu.memory_space<vmem>>, vector<1x1x128xf32>,
    %41 = tpu.transpose %14, [1, 0] : vector<1x128xf32> -> vector<128x1xf32>
    %42 = vector.broadcast %1 : f32 to vector<128x128xf32>
    %43 = arith.mulf %42, %28 : vector<128x128xf32>
    %44 = vector.broadcast %41 : vector<128x1xf32> to vector<128x128xf32>
    %45 = vector.broadcast %37 : vector<1x128xf32> to vector<128x128xf32>
    %46 = arith.mulf %44, %45 : vector<128x128xf32>
    %47 = vector.broadcast %0 : f32 to vector<128x128xf32>
    %48 = arith.mulf %47, %46 : vector<128x128xf32>
    %49 = arith.addf %43, %48 : vector<128x128xf32>
    %c0_33 = arith.constant 0 : index
    %c0_34 = arith.constant 0 : index
    %50 = vector.load %arg7[%c0_33, %c0_34] : memref<128x128xf32, #tpu.memory_space<vmem>>, vector<128x128xf32>
    tpu.vector_store %arg7[%c0_33, %c0_34], %49 {strides = array<i32>} : memref<128x128xf32, #tpu.memory_space<vmem>>, vector<128x128xf32>,
    %c0_35 = arith.constant 0 : index
    %c0_36 = arith.constant 0 : index
    %51 = vector.load %arg7[%c0_35, %c0_36] : memref<128x128xf32, #tpu.memory_space<vmem>>, vector<128x128xf32>
    %c0_37 = arith.constant 0 : index
    %c0_38 = arith.constant 0 : index
    %52 = vector.load %arg3[%c0_37, %c0_38] : memref<128x128xf32, #tpu.memory_space<vmem>>, vector<128x128xf32>
    %c0_39 = arith.constant 0 : index
    %c0_40 = arith.constant 0 : index
    %53 = vector.load %arg4[%c0_39, %c0_40] : memref<128x128xf32, #tpu.memory_space<vmem>>, vector<128x128xf32>
    %54 = arith.mulf %53, %51 : vector<128x128xf32>
    %55 = arith.addf %52, %54 : vector<128x128xf32>
    %cst_41 = arith.constant dense<0.000000e+00> : vector<1x128xf32>
    %56 = tpu.matmul %37, %55, %cst_41 {dimension_numbers = #tpu.dot_dimension_numbers<[1], [0], [0], [1], [0, 0, 1, 1], [], []>} : vector<1x128xf32>, vector<128x128xf32>, vector<1x128xf32> -> vector<1x128xf32>
    %c2 = arith.constant 2 : index
    %c0_42 = arith.constant 0 : index
    %c0_43 = arith.constant 0 : index
    %57 = vector.load %arg1[%c2, %c0_42, %c0_43] : memref<8x1x128xf32, #tpu.memory_space<vmem>>, vector<1x1x128xf32>
    %58 = vector.shape_cast %57 : vector<1x1x128xf32> to vector<1x128xf32>
    %59 = arith.addf %56, %58 : vector<1x128xf32>
    %60 = math.tanh %59 : vector<1x128xf32>
    %c2_44 = arith.constant 2 : index
    %c0_45 = arith.constant 0 : index
    %c0_46 = arith.constant 0 : index
    %61 = vector.load %arg6[%c2_44, %c0_45, %c0_46] : memref<8x1x128xf32, #tpu.memory_space<vmem>>, vector<1x1x128xf32>
    %62 = vector.shape_cast %61 : vector<1x1x128xf32> to vector<1x128xf32>
    %63 = vector.shape_cast %60 : vector<1x128xf32> to vector<1x1x128xf32>
    tpu.vector_store %arg6[%c2_44, %c0_45, %c0_46], %63 {strides = array<i32>} : memref<8x1x128xf32, #tpu.memory_space<vmem>>, vector<1x1x128xf32>,
    %64 = tpu.transpose %37, [1, 0] : vector<1x128xf32> -> vector<128x1xf32>
    %65 = vector.broadcast %1 : f32 to vector<128x128xf32>
    %66 = arith.mulf %65, %51 : vector<128x128xf32>
    %67 = vector.broadcast %64 : vector<128x1xf32> to vector<128x128xf32>
    %68 = vector.broadcast %60 : vector<1x128xf32> to vector<128x128xf32>
    %69 = arith.mulf %67, %68 : vector<128x128xf32>
    %70 = vector.broadcast %0 : f32 to vector<128x128xf32>
    %71 = arith.mulf %70, %69 : vector<128x128xf32>
    %72 = arith.addf %66, %71 : vector<128x128xf32>
    %c0_47 = arith.constant 0 : index
    %c0_48 = arith.constant 0 : index
    %73 = vector.load %arg7[%c0_47, %c0_48] : memref<128x128xf32, #tpu.memory_space<vmem>>, vector<128x128xf32>
    tpu.vector_store %arg7[%c0_47, %c0_48], %72 {strides = array<i32>} : memref<128x128xf32, #tpu.memory_space<vmem>>, vector<128x128xf32>,
    %c0_49 = arith.constant 0 : index
    %c0_50 = arith.constant 0 : index
    %74 = vector.load %arg7[%c0_49, %c0_50] : memref<128x128xf32, #tpu.memory_space<vmem>>, vector<128x128xf32>
    %c0_51 = arith.constant 0 : index
    %c0_52 = arith.constant 0 : index
    %75 = vector.load %arg3[%c0_51, %c0_52] : memref<128x128xf32, #tpu.memory_space<vmem>>, vector<128x128xf32>
    %c0_53 = arith.constant 0 : index
    %c0_54 = arith.constant 0 : index
    %76 = vector.load %arg4[%c0_53, %c0_54] : memref<128x128xf32, #tpu.memory_space<vmem>>, vector<128x128xf32>
    %77 = arith.mulf %76, %74 : vector<128x128xf32>
    %78 = arith.addf %75, %77 : vector<128x128xf32>
    %cst_55 = arith.constant dense<0.000000e+00> : vector<1x128xf32>
    %79 = tpu.matmul %60, %78, %cst_55 {dimension_numbers = #tpu.dot_dimension_numbers<[1], [0], [0], [1], [0, 0, 1, 1], [], []>} : vector<1x128xf32>, vector<128x128xf32>, vector<1x128xf32> -> vector<1x128xf32>
    %c3 = arith.constant 3 : index
    %c0_56 = arith.constant 0 : index
    %c0_57 = arith.constant 0 : index
    %80 = vector.load %arg1[%c3, %c0_56, %c0_57] : memref<8x1x128xf32, #tpu.memory_space<vmem>>, vector<1x1x128xf32>
    %81 = vector.shape_cast %80 : vector<1x1x128xf32> to vector<1x128xf32>
    %82 = arith.addf %79, %81 : vector<1x128xf32>
    %83 = math.tanh %82 : vector<1x128xf32>
    %c3_58 = arith.constant 3 : index
    %c0_59 = arith.constant 0 : index
    %c0_60 = arith.constant 0 : index
    %84 = vector.load %arg6[%c3_58, %c0_59, %c0_60] : memref<8x1x128xf32, #tpu.memory_space<vmem>>, vector<1x1x128xf32>
    %85 = vector.shape_cast %84 : vector<1x1x128xf32> to vector<1x128xf32>
    %86 = vector.shape_cast %83 : vector<1x128xf32> to vector<1x1x128xf32>
    tpu.vector_store %arg6[%c3_58, %c0_59, %c0_60], %86 {strides = array<i32>} : memref<8x1x128xf32, #tpu.memory_space<vmem>>, vector<1x1x128xf32>,
    %87 = tpu.transpose %60, [1, 0] : vector<1x128xf32> -> vector<128x1xf32>
    %88 = vector.broadcast %1 : f32 to vector<128x128xf32>
    %89 = arith.mulf %88, %74 : vector<128x128xf32>
    %90 = vector.broadcast %87 : vector<128x1xf32> to vector<128x128xf32>
    %91 = vector.broadcast %83 : vector<1x128xf32> to vector<128x128xf32>
    %92 = arith.mulf %90, %91 : vector<128x128xf32>
    %93 = vector.broadcast %0 : f32 to vector<128x128xf32>
    %94 = arith.mulf %93, %92 : vector<128x128xf32>
    %95 = arith.addf %89, %94 : vector<128x128xf32>
    %c0_61 = arith.constant 0 : index
    %c0_62 = arith.constant 0 : index
    %96 = vector.load %arg7[%c0_61, %c0_62] : memref<128x128xf32, #tpu.memory_space<vmem>>, vector<128x128xf32>
    tpu.vector_store %arg7[%c0_61, %c0_62], %95 {strides = array<i32>} : memref<128x128xf32, #tpu.memory_space<vmem>>, vector<128x128xf32>,
    %c0_63 = arith.constant 0 : index
    %c0_64 = arith.constant 0 : index
    %97 = vector.load %arg7[%c0_63, %c0_64] : memref<128x128xf32, #tpu.memory_space<vmem>>, vector<128x128xf32>
    %c0_65 = arith.constant 0 : index
    %c0_66 = arith.constant 0 : index
    %98 = vector.load %arg3[%c0_65, %c0_66] : memref<128x128xf32, #tpu.memory_space<vmem>>, vector<128x128xf32>
    %c0_67 = arith.constant 0 : index
    %c0_68 = arith.constant 0 : index
    %99 = vector.load %arg4[%c0_67, %c0_68] : memref<128x128xf32, #tpu.memory_space<vmem>>, vector<128x128xf32>
    %100 = arith.mulf %99, %97 : vector<128x128xf32>
    %101 = arith.addf %98, %100 : vector<128x128xf32>
    %cst_69 = arith.constant dense<0.000000e+00> : vector<1x128xf32>
    %102 = tpu.matmul %83, %101, %cst_69 {dimension_numbers = #tpu.dot_dimension_numbers<[1], [0], [0], [1], [0, 0, 1, 1], [], []>} : vector<1x128xf32>, vector<128x128xf32>, vector<1x128xf32> -> vector<1x128xf32>
    %c4 = arith.constant 4 : index
    %c0_70 = arith.constant 0 : index
    %c0_71 = arith.constant 0 : index
    %103 = vector.load %arg1[%c4, %c0_70, %c0_71] : memref<8x1x128xf32, #tpu.memory_space<vmem>>, vector<1x1x128xf32>
    %104 = vector.shape_cast %103 : vector<1x1x128xf32> to vector<1x128xf32>
    %105 = arith.addf %102, %104 : vector<1x128xf32>
    %106 = math.tanh %105 : vector<1x128xf32>
    %c4_72 = arith.constant 4 : index
    %c0_73 = arith.constant 0 : index
    %c0_74 = arith.constant 0 : index
    %107 = vector.load %arg6[%c4_72, %c0_73, %c0_74] : memref<8x1x128xf32, #tpu.memory_space<vmem>>, vector<1x1x128xf32>
    %108 = vector.shape_cast %107 : vector<1x1x128xf32> to vector<1x128xf32>
    %109 = vector.shape_cast %106 : vector<1x128xf32> to vector<1x1x128xf32>
    tpu.vector_store %arg6[%c4_72, %c0_73, %c0_74], %109 {strides = array<i32>} : memref<8x1x128xf32, #tpu.memory_space<vmem>>, vector<1x1x128xf32>,
    %110 = tpu.transpose %83, [1, 0] : vector<1x128xf32> -> vector<128x1xf32>
    %111 = vector.broadcast %1 : f32 to vector<128x128xf32>
    %112 = arith.mulf %111, %97 : vector<128x128xf32>
    %113 = vector.broadcast %110 : vector<128x1xf32> to vector<128x128xf32>
    %114 = vector.broadcast %106 : vector<1x128xf32> to vector<128x128xf32>
    %115 = arith.mulf %113, %114 : vector<128x128xf32>
    %116 = vector.broadcast %0 : f32 to vector<128x128xf32>
    %117 = arith.mulf %116, %115 : vector<128x128xf32>
    %118 = arith.addf %112, %117 : vector<128x128xf32>
    %c0_75 = arith.constant 0 : index
    %c0_76 = arith.constant 0 : index
    %119 = vector.load %arg7[%c0_75, %c0_76] : memref<128x128xf32, #tpu.memory_space<vmem>>, vector<128x128xf32>
    tpu.vector_store %arg7[%c0_75, %c0_76], %118 {strides = array<i32>} : memref<128x128xf32, #tpu.memory_space<vmem>>, vector<128x128xf32>,
    %c0_77 = arith.constant 0 : index
    %c0_78 = arith.constant 0 : index
    %120 = vector.load %arg7[%c0_77, %c0_78] : memref<128x128xf32, #tpu.memory_space<vmem>>, vector<128x128xf32>
    %c0_79 = arith.constant 0 : index
    %c0_80 = arith.constant 0 : index
    %121 = vector.load %arg3[%c0_79, %c0_80] : memref<128x128xf32, #tpu.memory_space<vmem>>, vector<128x128xf32>
    %c0_81 = arith.constant 0 : index
    %c0_82 = arith.constant 0 : index
    %122 = vector.load %arg4[%c0_81, %c0_82] : memref<128x128xf32, #tpu.memory_space<vmem>>, vector<128x128xf32>
    %123 = arith.mulf %122, %120 : vector<128x128xf32>
    %124 = arith.addf %121, %123 : vector<128x128xf32>
    %cst_83 = arith.constant dense<0.000000e+00> : vector<1x128xf32>
    %125 = tpu.matmul %106, %124, %cst_83 {dimension_numbers = #tpu.dot_dimension_numbers<[1], [0], [0], [1], [0, 0, 1, 1], [], []>} : vector<1x128xf32>, vector<128x128xf32>, vector<1x128xf32> -> vector<1x128xf32>
    %c5 = arith.constant 5 : index
    %c0_84 = arith.constant 0 : index
    %c0_85 = arith.constant 0 : index
    %126 = vector.load %arg1[%c5, %c0_84, %c0_85] : memref<8x1x128xf32, #tpu.memory_space<vmem>>, vector<1x1x128xf32>
    %127 = vector.shape_cast %126 : vector<1x1x128xf32> to vector<1x128xf32>
    %128 = arith.addf %125, %127 : vector<1x128xf32>
    %129 = math.tanh %128 : vector<1x128xf32>
    %c5_86 = arith.constant 5 : index
    %c0_87 = arith.constant 0 : index
    %c0_88 = arith.constant 0 : index
    %130 = vector.load %arg6[%c5_86, %c0_87, %c0_88] : memref<8x1x128xf32, #tpu.memory_space<vmem>>, vector<1x1x128xf32>
    %131 = vector.shape_cast %130 : vector<1x1x128xf32> to vector<1x128xf32>
    %132 = vector.shape_cast %129 : vector<1x128xf32> to vector<1x1x128xf32>
    tpu.vector_store %arg6[%c5_86, %c0_87, %c0_88], %132 {strides = array<i32>} : memref<8x1x128xf32, #tpu.memory_space<vmem>>, vector<1x1x128xf32>,
    %133 = tpu.transpose %106, [1, 0] : vector<1x128xf32> -> vector<128x1xf32>
    %134 = vector.broadcast %1 : f32 to vector<128x128xf32>
    %135 = arith.mulf %134, %120 : vector<128x128xf32>
    %136 = vector.broadcast %133 : vector<128x1xf32> to vector<128x128xf32>
    %137 = vector.broadcast %129 : vector<1x128xf32> to vector<128x128xf32>
    %138 = arith.mulf %136, %137 : vector<128x128xf32>
    %139 = vector.broadcast %0 : f32 to vector<128x128xf32>
    %140 = arith.mulf %139, %138 : vector<128x128xf32>
    %141 = arith.addf %135, %140 : vector<128x128xf32>
    %c0_89 = arith.constant 0 : index
    %c0_90 = arith.constant 0 : index
    %142 = vector.load %arg7[%c0_89, %c0_90] : memref<128x128xf32, #tpu.memory_space<vmem>>, vector<128x128xf32>
    tpu.vector_store %arg7[%c0_89, %c0_90], %141 {strides = array<i32>} : memref<128x128xf32, #tpu.memory_space<vmem>>, vector<128x128xf32>,
    %c0_91 = arith.constant 0 : index
    %c0_92 = arith.constant 0 : index
    %143 = vector.load %arg7[%c0_91, %c0_92] : memref<128x128xf32, #tpu.memory_space<vmem>>, vector<128x128xf32>
    %c0_93 = arith.constant 0 : index
    %c0_94 = arith.constant 0 : index
    %144 = vector.load %arg3[%c0_93, %c0_94] : memref<128x128xf32, #tpu.memory_space<vmem>>, vector<128x128xf32>
    %c0_95 = arith.constant 0 : index
    %c0_96 = arith.constant 0 : index
    %145 = vector.load %arg4[%c0_95, %c0_96] : memref<128x128xf32, #tpu.memory_space<vmem>>, vector<128x128xf32>
    %146 = arith.mulf %145, %143 : vector<128x128xf32>
    %147 = arith.addf %144, %146 : vector<128x128xf32>
    %cst_97 = arith.constant dense<0.000000e+00> : vector<1x128xf32>
    %148 = tpu.matmul %129, %147, %cst_97 {dimension_numbers = #tpu.dot_dimension_numbers<[1], [0], [0], [1], [0, 0, 1, 1], [], []>} : vector<1x128xf32>, vector<128x128xf32>, vector<1x128xf32> -> vector<1x128xf32>
    %c6 = arith.constant 6 : index
    %c0_98 = arith.constant 0 : index
    %c0_99 = arith.constant 0 : index
    %149 = vector.load %arg1[%c6, %c0_98, %c0_99] : memref<8x1x128xf32, #tpu.memory_space<vmem>>, vector<1x1x128xf32>
    %150 = vector.shape_cast %149 : vector<1x1x128xf32> to vector<1x128xf32>
    %151 = arith.addf %148, %150 : vector<1x128xf32>
    %152 = math.tanh %151 : vector<1x128xf32>
    %c6_100 = arith.constant 6 : index
    %c0_101 = arith.constant 0 : index
    %c0_102 = arith.constant 0 : index
    %153 = vector.load %arg6[%c6_100, %c0_101, %c0_102] : memref<8x1x128xf32, #tpu.memory_space<vmem>>, vector<1x1x128xf32>
    %154 = vector.shape_cast %153 : vector<1x1x128xf32> to vector<1x128xf32>
    %155 = vector.shape_cast %152 : vector<1x128xf32> to vector<1x1x128xf32>
    tpu.vector_store %arg6[%c6_100, %c0_101, %c0_102], %155 {strides = array<i32>} : memref<8x1x128xf32, #tpu.memory_space<vmem>>, vector<1x1x128xf32>,
    %156 = tpu.transpose %129, [1, 0] : vector<1x128xf32> -> vector<128x1xf32>
    %157 = vector.broadcast %1 : f32 to vector<128x128xf32>
    %158 = arith.mulf %157, %143 : vector<128x128xf32>
    %159 = vector.broadcast %156 : vector<128x1xf32> to vector<128x128xf32>
    %160 = vector.broadcast %152 : vector<1x128xf32> to vector<128x128xf32>
    %161 = arith.mulf %159, %160 : vector<128x128xf32>
    %162 = vector.broadcast %0 : f32 to vector<128x128xf32>
    %163 = arith.mulf %162, %161 : vector<128x128xf32>
    %164 = arith.addf %158, %163 : vector<128x128xf32>
    %c0_103 = arith.constant 0 : index
    %c0_104 = arith.constant 0 : index
    %165 = vector.load %arg7[%c0_103, %c0_104] : memref<128x128xf32, #tpu.memory_space<vmem>>, vector<128x128xf32>
    tpu.vector_store %arg7[%c0_103, %c0_104], %164 {strides = array<i32>} : memref<128x128xf32, #tpu.memory_space<vmem>>, vector<128x128xf32>,
    %c0_105 = arith.constant 0 : index
    %c0_106 = arith.constant 0 : index
    %166 = vector.load %arg7[%c0_105, %c0_106] : memref<128x128xf32, #tpu.memory_space<vmem>>, vector<128x128xf32>
    %c0_107 = arith.constant 0 : index
    %c0_108 = arith.constant 0 : index
    %167 = vector.load %arg3[%c0_107, %c0_108] : memref<128x128xf32, #tpu.memory_space<vmem>>, vector<128x128xf32>
    %c0_109 = arith.constant 0 : index
    %c0_110 = arith.constant 0 : index
    %168 = vector.load %arg4[%c0_109, %c0_110] : memref<128x128xf32, #tpu.memory_space<vmem>>, vector<128x128xf32>
    %169 = arith.mulf %168, %166 : vector<128x128xf32>
    %170 = arith.addf %167, %169 : vector<128x128xf32>
    %cst_111 = arith.constant dense<0.000000e+00> : vector<1x128xf32>
    %171 = tpu.matmul %152, %170, %cst_111 {dimension_numbers = #tpu.dot_dimension_numbers<[1], [0], [0], [1], [0, 0, 1, 1], [], []>} : vector<1x128xf32>, vector<128x128xf32>, vector<1x128xf32> -> vector<1x128xf32>
    %c7 = arith.constant 7 : index
    %c0_112 = arith.constant 0 : index
    %c0_113 = arith.constant 0 : index
    %172 = vector.load %arg1[%c7, %c0_112, %c0_113] : memref<8x1x128xf32, #tpu.memory_space<vmem>>, vector<1x1x128xf32>
    %173 = vector.shape_cast %172 : vector<1x1x128xf32> to vector<1x128xf32>
    %174 = arith.addf %171, %173 : vector<1x128xf32>
    %175 = math.tanh %174 : vector<1x128xf32>
    %c7_114 = arith.constant 7 : index
    %c0_115 = arith.constant 0 : index
    %c0_116 = arith.constant 0 : index
    %176 = vector.load %arg6[%c7_114, %c0_115, %c0_116] : memref<8x1x128xf32, #tpu.memory_space<vmem>>, vector<1x1x128xf32>
    %177 = vector.shape_cast %176 : vector<1x1x128xf32> to vector<1x128xf32>
    %178 = vector.shape_cast %175 : vector<1x128xf32> to vector<1x1x128xf32>
    tpu.vector_store %arg6[%c7_114, %c0_115, %c0_116], %178 {strides = array<i32>} : memref<8x1x128xf32, #tpu.memory_space<vmem>>, vector<1x1x128xf32>,
    %179 = tpu.transpose %152, [1, 0] : vector<1x128xf32> -> vector<128x1xf32>
    %180 = vector.broadcast %1 : f32 to vector<128x128xf32>
    %181 = arith.mulf %180, %166 : vector<128x128xf32>
    %182 = vector.broadcast %179 : vector<128x1xf32> to vector<128x128xf32>
    %183 = vector.broadcast %175 : vector<1x128xf32> to vector<128x128xf32>
    %184 = arith.mulf %182, %183 : vector<128x128xf32>
    %185 = vector.broadcast %0 : f32 to vector<128x128xf32>
    %186 = arith.mulf %185, %184 : vector<128x128xf32>
    %187 = arith.addf %181, %186 : vector<128x128xf32>
    %c0_117 = arith.constant 0 : index
    %c0_118 = arith.constant 0 : index
    %188 = vector.load %arg7[%c0_117, %c0_118] : memref<128x128xf32, #tpu.memory_space<vmem>>, vector<128x128xf32>
    tpu.vector_store %arg7[%c0_117, %c0_118], %187 {strides = array<i32>} : memref<128x128xf32, #tpu.memory_space<vmem>>, vector<128x128xf32>,
    return
  }
}

</mosaic_0001>

<bundles_post_ra>
// kernel: network_forward_seq.1
= control target key start
LH: loop header
LB: loop body
LE: loop exit
PB: predicated region body
PF: predicated region fallthrough
CT: control target
= control target key end

     0   :  { %v5552_v3 = vmov 0.0|0.0   ;;  %vm3555_vm0 = vmmov 0   ;;  %v5550_v11 = vmov 0.0   ;;  %v3557_v12 = vmov 0   ;;  %s5542_s0 = inlined_call_operand.<no memory space> [shape: f32[1], index: 0, kind: input, shape index: {}]   ;;  %s5543_s1 = inlined_call_operand.vmem [shape: f32[8,1,128], index: 1, kind: input, shape index: {}]   ;;  %s5544_s2 = inlined_call_operand.vmem [shape: f32[1,128], index: 2, kind: input, shape index: {}]   ;;  %s5545_s3 = inlined_call_operand.vmem [shape: f32[128,128], index: 3, kind: input, shape index: {}]   ;;  %s5546_s4 = inlined_call_operand.vmem [shape: f32[128,128], index: 4, kind: input, shape index: {}]   ;;  %s5547_s5 = inlined_call_operand.vmem [shape: f32[128,128], index: 5, kind: input, shape index: {}, may-alias: {5,7}]   ;;  %s5548_s6 = inlined_call_operand.hbm [shape: f32[8,1,128], index: 6, kind: output, shape index: {0}]   ;;  %s5549_s7 = inlined_call_operand.vmem [shape: f32[128,128], index: 7, kind: output, shape index: {1}, may-alias: {5,7}]  }
   0x1   :  { %v3604_v0 = vld [vmem:[%s5544_s2] sm:$0x1]  ;;  %v3614_v2 = vld [vmem:[%s5547_s5 + $0x8] sm:$0xff]  ;;  %3313 = vmatprep.subr.bf16.mxu0 %v5552_v3  ;;  %v3643_v9 = vld [vmem:[%s5547_s5 + $0x10] sm:$0xff]  ;;  %3065 = vmatprep.mubr.msk.f32.mxu0 %vm3555_vm0, %v5550_v11 }
   0x2   :  { %v3609_v1 = vld [vmem:[%s5547_s5] sm:$0xff]  ;;  %215 = vxpose.xlu0.b32.start.end [1/1] (short) %v3604_v0, 128  ;;  %v3626_v5 = vld [vmem:[%s5545_s3 + $0x8] sm:$0xff]  ;;  %v3648_v10 = vld [vmem:[%s5547_s5 + $0x18] sm:$0xff]  ;;  %3513 = vset.pattern.permute.xlu1 %v3557_v12 }
   0x3   :  { %v3621_v4 = vld [vmem:[%s5545_s3] sm:$0xff]  ;;  %5594 = vst [vmem:[#allocation7_spill] sm:$0xff] %v3626_v5  ;;  %v3636_v7 = vld [vmem:[%s5546_s4 + $0x8] sm:$0xff]  ;;  %v3658_v14 = vld [vmem:[%s5545_s3 + $0x10] sm:$0xff]  ;;  %3337 = vmatprep.subr.bf16.mxu1 %v5552_v3  ;;  %3100 = vmatprep.mubr.msk.f32.mxu1 %vm3555_vm0, %v5550_v11 }
   0x4   :  { %5593 = vst [vmem:[#allocation6_spill] sm:$0xff] %v3621_v4  ;;  %v3631_v6 = vld [vmem:[%s5546_s4] sm:$0xff]  ;;  %v111_v13 = vmul.f32 %v3636_v7, %v3614_v2  ;;  %v3663_v15 = vld [vmem:[%s5545_s3 + $0x18] sm:$0xff]  ;;  %v3668_v16 = vld [vmem:[%s5546_s4 + $0x10] sm:$0xff] }
   0x5   :  { %v110_v8 = vmul.f32 %v3631_v6, %v3609_v1  ;;  %v3677_v18 = vld [vmem:[%s5546_s4 + $0x18] sm:$0xff]  ;;  %v112_v19 = vmul.f32 %v3668_v16, %v3643_v9  ;;  %v3684_v20 = vld [vmem:[%s5547_s5 + $0x20] sm:$0xff]  ;;  %v3689_v21 = vld [vmem:[%s5547_s5 + $0x28] sm:$0xff] }
   0x6   :  { %5595 = vst [vmem:[#allocation8_spill] sm:$0xff] %v3677_v18  ;;  %v127_v22 = vadd.f32 %v111_v13, %v3626_v5  ;;  %v113_v23 = vmul.f32 %v3677_v18, %v3648_v10  ;;  %v3697_v24 = vld [vmem:[%s5545_s3 + $0x20] sm:$0xff]  ;;  %v3702_v25 = vld [vmem:[%s5545_s3 + $0x28] sm:$0xff]  ;;  %v3720_v30 = vld [vmem:[%s5547_s5 + $0x30] sm:$0xff] }
   0x7   :  { %v126_v17 = vadd.f32 %v110_v8, %v3621_v4  ;;  %v3707_v26 = vld [vmem:[%s5546_s4 + $0x20] sm:$0xff]  ;;  %v128_v27 = vadd.f32 %v112_v19, %v3658_v14  ;;  %v3713_v28 = vld [vmem:[%s5546_s4 + $0x28] sm:$0xff]  ;;  %v3725_v31 = vld [vmem:[%s5547_s5 + $0x38] sm:$0xff] }
   0x8   :  { %v114_v29 = vmul.f32 %v3707_v26, %v3684_v20  ;;  %v129_v33 = vadd.f32 %v113_v23, %v3663_v15  ;;  %v115_v34 = vmul.f32 %v3713_v28, %v3689_v21  ;;  %v3733_v35 = vld [vmem:[%s5546_s4 + $0x30] sm:$0xff]  ;;  %v3739_v37 = vld [vmem:[%s5546_s4 + $0x38] sm:$0xff]  ;;  %v3754_v43 = vld [vmem:[%s5547_s5 + $0x40] sm:$0xff] }
   0x9   :  { %v3314_v32 = vpack.c.bf16 %v127_v22, %v126_v17  ;;  %v3745_v40 = vld [vmem:[%s5545_s3 + $0x30] sm:$0xff]  ;;  %v116_v41 = vmul.f32 %v3733_v35, %v3720_v30  ;;  %v117_v42 = vmul.f32 %v3739_v37, %v3725_v31  ;;  %v3759_v44 = vld [vmem:[%s5546_s4 + $0x40] sm:$0xff]  ;;  %v3765_v45 = vld [vmem:[%s5545_s3 + $0x38] sm:$0xff] }
   0xa   :  { %v130_v36 = vadd.f32 %v114_v29, %v3697_v24  ;;  %v3317_v38 = vpack.c.bf16 %v129_v33, %v128_v27  ;;  %v131_v39 = vadd.f32 %v115_v34, %v3702_v25  ;;  %v3770_v46 = vld [vmem:[%s5547_s5 + $0x48] sm:$0xff]  ;;  %v118_v48 = vmul.f32 %v3759_v44, %v3754_v43  ;;  %v3784_v52 = vld [vmem:[%s5545_s3 + $0x40] sm:$0xff]  ;;  %v3796_v55 = vld [vmem:[%s5547_s5 + $0x50] sm:$0xff] }
   0xb   :  { %3315 = vmatpush3.bf16.msra.mxu0 %v3314_v32  ;;  %v3775_v47 = vld [vmem:[%s5546_s4 + $0x48] sm:$0xff]  ;;  %v132_v50 = vadd.f32 %v116_v41, %v3745_v40  ;;  %v133_v51 = vadd.f32 %v117_v42, %v3765_v45  ;;  %v3802_v56 = vld [vmem:[%s5547_s5 + $0x58] sm:$0xff]  ;;  %v3807_v57 = vld [vmem:[%s5546_s4 + $0x50] sm:$0xff] }
   0xc   :  { %3316 = vmatprep.subr.bf16.mxu0 %v5552_v3  ;;  %v3320_v49 = vpack.c.bf16 %v131_v39, %v130_v36  ;;  %v3789_v53 = vld [vmem:[%s5545_s3 + $0x48] sm:$0xff]  ;;  %v119_v54 = vmul.f32 %v3775_v47, %v3770_v46  ;;  %v3812_v58 = vld [vmem:[%s5546_s4 + $0x58] sm:$0xff]  ;;  %v134_v59 = vadd.f32 %v118_v48, %v3784_v52 }
   0xf   :  { %3318 = vmatpush3.bf16.msra.mxu0 %v3317_v38 }
  0x10   :  { %3319 = vmatprep.subr.bf16.mxu0 %v5552_v3 }
  0x11   :  { %14 = vsyncpa [#allocation4], 0  ;;  %v3323_v60 = vpack.c.bf16 %v133_v51, %v132_v50  ;;  %v135_v61 = vadd.f32 %v119_v54, %v3789_v53  ;;  %v3819_v62 = vld [vmem:[%s5545_s3 + $0x50] sm:$0xff]  ;;  %v120_v63 = vmul.f32 %v3807_v57, %v3796_v55  ;;  %v121_v8 = vmul.f32 %v3812_v58, %v3802_v56  ;;  %v3828_v13 = vld [vmem:[%s5547_s5 + $0x60] sm:$0xff]  ;;  %s28_s29 = ssub.f32 1.0, %s5542_s0  ;;  %s3558_s17 = smov [#allocation3]  }
  0x12   :  { %v3833_v17 = vld [vmem:[%s5546_s4 + $0x60] sm:$0xff]  ;;  %v3839_v19 = vld [vmem:[%s5545_s3 + $0x58] sm:$0xff]  ;;  %v3844_v22 = vld [vmem:[%s5547_s5 + $0x68] sm:$0xff]  ;;  %s2875_s18 = sshll.u32 %s3558_s17, 4  ;;  %s5408_s18 = int_to_ptr.vmem [resolvable:$true] %s2875_s18 }
  0x13   :  { %3321 = vmatpush3.bf16.msra.mxu0 %v3320_v49  ;;  %v3849_v23 = vld [vmem:[%s5546_s4 + $0x68] sm:$0xff]  ;;  %v122_v27 = vmul.f32 %v3833_v17, %v3828_v13  ;;  %v3326_v29 = vpack.c.bf16 %v135_v61, %v134_v59  ;;  %v136_v32 = vadd.f32 %v120_v63, %v3819_v62  ;;  %v137_v33 = vadd.f32 %v121_v8, %v3839_v19  ;;  %v3858_v34 = vld [vmem:[%s5545_s3 + $0x60] sm:$0xff]  ;;  %v3870_v39 = vld [vmem:[%s5547_s5 + $0x70] sm:$0xff]  ;;  %p3535_p1 = scmp.lt.s32.totalorder %s5408_s18, %s5408_s18 }
  0x14   :  { %3322 = vmatprep.subr.bf16.mxu0 %v5552_v3  ;;  %5596 = vst [vmem:[#allocation9_spill] sm:$0xff] %v3858_v34  ;;  %v3863_v36 = vld [vmem:[%s5545_s3 + $0x68] sm:$0xff]  ;;  %v123_v38 = vmul.f32 %v3849_v23, %v3844_v22  ;;  %v3876_v41 = vld [vmem:[%s5547_s5 + $0x78] sm:$0xff]  ;;  %v3881_v42 = vld [vmem:[%s5546_s4 + $0x70] sm:$0xff] }
  0x15   :  { %5597 = vst [vmem:[#allocation10_spill] sm:$0xff] %v3863_v36  ;;  %5598 = vst [vmem:[#allocation11_spill] sm:$0xff] %v3881_v42  ;;  %v3886_v48 = vld [vmem:[%s5546_s4 + $0x78] sm:$0xff]  ;;  %v138_v49 = vadd.f32 %v122_v27, %v3858_v34  ;;  %v3329_v50 = vpack.c.bf16 %v137_v33, %v136_v32  ;;  %v124_v54 = vmul.f32 %v3881_v42, %v3870_v39 }
  0x16   :  { %5599 = vst [vmem:[#allocation12_spill] sm:$0xff] %v3886_v48  ;;  %v139_v51 = vadd.f32 %v123_v38, %v3863_v36  ;;  %v125_v59 = vmul.f32 %v3886_v48, %v3876_v41  ;;  %v3903_v61 = vld [vmem:[%s5545_s3 + $0x78] sm:$0xff] }
  0x17   :  { %3324 = vmatpush3.bf16.msra.mxu0 %v3323_v60  ;;  %v3898_v60 = vld [vmem:[%s5545_s3 + $0x70] sm:$0xff]  ;;  %5601 = vst [vmem:[#allocation14_spill] sm:$0xff] %v3903_v61 }
  0x18   :  { %3325 = vmatprep.subr.bf16.mxu0 %v5552_v3  ;;  %5600 = vst [vmem:[#allocation13_spill] sm:$0xff] %v3898_v60  ;;  %v3332_v63 = vpack.c.bf16 %v139_v51, %v138_v49  ;;  %v140_v8 = vadd.f32 %v124_v54, %v3898_v60  ;;  %v141_v27 = vadd.f32 %v125_v59, %v3903_v61 }
  0x1b   :  { %3327 = vmatpush3.bf16.msra.mxu0 %v3326_v29  ;;  %v3335_v29 = vpack.c.bf16 %v141_v27, %v140_v8 }
  0x1c   :  { %3328 = vmatprep.subr.bf16.mxu0 %v5552_v3 }
  0x1f   :  { %3330 = vmatpush3.bf16.msra.mxu0 %v3329_v50 }
  0x20   :  { %3331 = vmatprep.subr.bf16.mxu0 %v5552_v3 }
  0x23   :  { %3333 = vmatpush3.bf16.msra.mxu0 %v3332_v63 }
  0x24   :  { %3334 = vmatprep.subr.bf16.mxu0 %v5552_v3 }
  0x27   :  { %3336 = vmatpush3.bf16.msra.mxu0 %v3335_v29 }
  0x28   :  { %3361 = vmatprep.subr.bf16.mxu0 %v5552_v3 }
  0x2a   :  { %3066 = vmatmul.mubr.f32.vlgmr.msra.gmra.mrb[0].mxu0 %v3604_v0 }
  0x2b   :  { %3135 = vmatprep.mubr.msk.f32.mxu0 %vm3555_vm0, %v5550_v11  ;;  %3512 = vset.pattern.permute.xlu0 %v3557_v12 }
  0x82   :  { %v231_v32 = vpop.trf.xlu0 }
  0x83   :  { %266 = vperm.xlu0 %3512, %v231_v32  }
  0x86   :  { %v232_v33 = vpop.trf.xlu0 }
  0x87   :  { %271 = vperm.xlu1 %3513, %v232_v33  }
  0x8a   :  { %v233_v38 = vpop.trf.xlu0 }
  0x8b   :  { %276 = vperm.xlu1 %3513, %v233_v38   ;;  %v142_v38 = vld [vmem:[%s5543_s1] sm:$0x1] }
  0x8e   :  { %v234_v49 = vpop.trf.xlu0 }
  0x8f   :  { %281 = vperm.xlu1 %3513, %v234_v49  }
  0x92   :  { %v235_v50 = vpop.trf.xlu0 }
  0x93   :  { %286 = vperm.xlu1 %3513, %v235_v50  }
  0x96   :  { %v236_v51 = vpop.trf.xlu0 }
  0x97   :  { %291 = vperm.xlu1 %3513, %v236_v51  }
  0x9a   :  { %v237_v54 = vpop.trf.xlu0 }
  0x9b   :  { %296 = vperm.xlu1 %3513, %v237_v54   ;;  %v344_v54 = vlaneseq }
  0x9e   :  { %v238_v0 = vpop.trf.xlu0 }
  0x9f   :  { %301 = vperm.xlu1 %3513, %v238_v0   ;;  %v345_v0 = vshrl.u32 %v344_v54, 7 }
  0xa2   :  { %v239_v59 = vpop.trf.xlu0 }
  0xa3   :  { %306 = vperm.xlu1 %3513, %v239_v59   ;;  %v3920_v59 = vsub.s32 0, %v345_v0 }
  0xa5   :  { %5602 = vst [vmem:[#allocation15_spill] sm:$0xff] %v3920_v59 }
  0xa6   :  { %v240_v63 = vpop.trf.xlu0 }
  0xa7   :  { %311 = vperm.xlu1 %3513, %v240_v63  }
  0xaa   :  { %v241_v12 = vpop.trf.xlu0 }
  0xab   :  { %316 = vperm.xlu1 %3513, %v241_v12   ;;  %v3922_v12 = vstv %s28_s29 }
  0xae   :  { %v242_v8 = vpop.trf.xlu0 }
  0xaf   :  { %321 = vperm.xlu1 %3513, %v242_v8  }
  0xb2   :  { %v243_v27 = vpop.trf.xlu0 }
  0xb3   :  { %326 = vperm.xlu1 %3513, %v243_v27  }
  0xb6   :  { %v244_v29 = vpop.trf.xlu0 }
  0xb7   :  { %331 = vperm.xlu1 %3513, %v244_v29  }
  0xba   :  { %v245_v32 = vpop.trf.xlu0 }
  0xbb   :  { %336 = vperm.xlu1 %3513, %v245_v32   ;;  %v248_v32 = vmul.f32 %v3922_v12, %v3609_v1 }
  0xbe   :  { %v246_v33 = vpop.trf.xlu0 }
  0xbf   :  { %341 = vperm.xlu1 %3513, %v246_v33  }
  0xfd   :  { %v209_v49 = vpop.f32.mrb[0].mxu0 }
  0xfe   :  { %v210_v50 = vadd.f32 %v209_v49, %v142_v38  ;;  %v3067_v51 = vpop.f32.mrb[1].mxu0  ;;  %v3937_v38 = vstv %s5542_s0  ;;  %v249_v49 = vmul.f32 %v3922_v12, %v3614_v2 }
  0xff   :  { %v250_v51 = vmul.f32 %v3922_v12, %v3643_v9 }
 0x100   :  { %3514 = vtanh.f32 %v210_v50 }
 0x102   :  { %v267_v33 = vpop.permute.xlu0 %266 }
 0x106   :  { %v272_v63 = vpop.permute.xlu1 %271 }
 0x10a   :  { %v3924_v8 = vpop.eup %3514  ;;  %v277_v29 = vpop.permute.xlu1 %276 }
 0x10b   :  { %5603 = vst [vmem:[#allocation16_spill] sm:$0xff] %v3924_v8  ;;  %v3928_v27 = vrot.slane %v3924_v8, %v3920_v59  ;;  %214 = vst [vmem:[#allocation3] sm:$0x1] %v3924_v8  ;;  %568 = vxpose.xlu1.b32.start.end [1/1] (short) %v3924_v8, 128  ;;  %v251_v8 = vmul.f32 %v3922_v12, %v3648_v10 }
 0x10d   :  { %v349_v50 = vmul.f32 %v3928_v27, %v272_v63  ;;  %v350_v54 = vmul.f32 %v3928_v27, %v277_v29  ;;  %v348_v0 = vmul.f32 %v3928_v27, %v267_v33 }
 0x10e   :  { %v282_v3 = vpop.permute.xlu1 %281 }
 0x10f   :  { %v366_v1 = vmul.f32 %v3937_v38, %v349_v50  ;;  %v367_v11 = vmul.f32 %v3937_v38, %v350_v54  ;;  %v365_v59 = vmul.f32 %v3937_v38, %v348_v0  ;;  %v351_v2 = vmul.f32 %v3928_v27, %v282_v3 }
 0x110   :  { %v252_v3 = vmul.f32 %v3922_v12, %v3684_v20 }
 0x111   :  { %v3952_v63 = vadd.f32 %v366_v1, %v249_v49  ;;  %v3954_v61 = vadd.f32 %v367_v11, %v250_v51  ;;  %v3956_v9 = vadd.f32 %v365_v59, %v248_v32  ;;  %v368_v29 = vmul.f32 %v3937_v38, %v351_v2 }
 0x112   :  { %v287_v33 = vpop.permute.xlu1 %286 }
 0x113   :  { %v461_v50 = vmul.f32 %v3956_v9, %v3631_v6  ;;  %v462_v54 = vmul.f32 %v3952_v63, %v3636_v7  ;;  %v3963_v0 = vadd.f32 %v368_v29, %v251_v8  ;;  %v352_v10 = vmul.f32 %v3928_v27, %v287_v33 }
 0x114   :  { %v463_v11 = vmul.f32 %v3954_v61, %v3668_v16  ;;  %v253_v8 = vmul.f32 %v3922_v12, %v3689_v21  ;;  %v254_v21 = vmul.f32 %v3922_v12, %v3720_v30 }
 0x115   :  { %v477_v59 = vadd.f32 %v461_v50, %v3621_v4  ;;  %v478_v32 = vadd.f32 %v462_v54, %v3626_v5  ;;  %v369_v49 = vmul.f32 %v3937_v38, %v352_v10  ;;  %v464_v51 = vmul.f32 %v3963_v0, %v3677_v18 }
 0x116   :  { %v292_v1 = vpop.permute.xlu1 %291  ;;  %v479_v33 = vadd.f32 %v463_v11, %v3658_v14  ;;  %v5604_v10 = vmov 0.0|0.0  }
 0x117   :  { %v3338_v2 = vpack.c.bf16 %v478_v32, %v477_v59  ;;  %v3977_v20 = vadd.f32 %v369_v49, %v252_v3  ;;  %v353_v29 = vmul.f32 %v3928_v27, %v292_v1  ;;  %v480_v50 = vadd.f32 %v464_v51, %v3663_v15 }
 0x118   :  { %v255_v51 = vmul.f32 %v3922_v12, %v3725_v31 }
 0x119   :  { %3339 = vmatpush3.bf16.msra.mxu1 %v3338_v2  ;;  %v370_v54 = vmul.f32 %v3937_v38, %v353_v29  ;;  %v3341_v5 = vpack.c.bf16 %v480_v50, %v479_v33  ;;  %v465_v59 = vmul.f32 %v3977_v20, %v3707_v26  ;;  %v256_v50 = vmul.f32 %v3922_v12, %v3754_v43 }
 0x11a   :  { %3340 = vmatprep.subr.bf16.mxu1 %v5604_v10  ;;  %v297_v4 = vpop.permute.xlu1 %296 }
 0x11b   :  { %v3984_v18 = vadd.f32 %v370_v54, %v253_v8  ;;  %v354_v3 = vmul.f32 %v3928_v27, %v297_v4  ;;  %v481_v4 = vadd.f32 %v465_v59, %v3697_v24 }
 0x11d   :  { %3342 = vmatpush3.bf16.msra.mxu1 %v3341_v5  ;;  %v371_v11 = vmul.f32 %v3937_v38, %v354_v3  ;;  %v466_v32 = vmul.f32 %v3984_v18, %v3713_v28 }
 0x11e   :  { %3343 = vmatprep.subr.bf16.mxu1 %v5604_v10  ;;  %v302_v49 = vpop.permute.xlu1 %301 }
 0x11f   :  { %v3997_v1 = vadd.f32 %v371_v11, %v254_v21  ;;  %v355_v30 = vmul.f32 %v3928_v27, %v302_v49  ;;  %v482_v8 = vadd.f32 %v466_v32, %v3702_v25  ;;  %v257_v11 = vmul.f32 %v3922_v12, %v3770_v46 }
 0x121   :  { %v372_v5 = vmul.f32 %v3937_v38, %v355_v30  ;;  %v3344_v2 = vpack.c.bf16 %v482_v8, %v481_v4  ;;  %v467_v31 = vmul.f32 %v3997_v1, %v3733_v35 }
 0x122   :  { %v307_v29 = vpop.permute.xlu1 %306 }
 0x123   :  { %v4003_v33 = vadd.f32 %v372_v5, %v255_v51  ;;  %v356_v54 = vmul.f32 %v3928_v27, %v307_v29  ;;  %3345 = vmatpush3.bf16.msra.mxu1 %v3344_v2  ;;  %v483_v49 = vadd.f32 %v467_v31, %v3745_v40  ;;  %v258_v2 = vmul.f32 %v3922_v12, %v3796_v55 }
 0x124   :  { %3346 = vmatprep.subr.bf16.mxu1 %v5604_v10 }
 0x125   :  { %v373_v21 = vmul.f32 %v3937_v38, %v356_v54  ;;  %v468_v3 = vmul.f32 %v4003_v33, %v3739_v37 }
 0x126   :  { %v312_v59 = vpop.permute.xlu1 %311 }
 0x127   :  { %v4016_v32 = vadd.f32 %v373_v21, %v256_v50  ;;  %v357_v43 = vmul.f32 %v3928_v27, %v312_v59  ;;  %v484_v51 = vadd.f32 %v468_v3, %v3765_v45  ;;  %v259_v21 = vmul.f32 %v3922_v12, %v3802_v56 }
 0x129   :  { %v374_v30 = vmul.f32 %v3937_v38, %v357_v43  ;;  %v3347_v4 = vpack.c.bf16 %v484_v51, %v483_v49  ;;  %v469_v46 = vmul.f32 %v4016_v32, %v3759_v44 }
 0x12a   :  { %v317_v8 = vpop.permute.xlu1 %316 }
 0x12b   :  { %v4022_v5 = vadd.f32 %v374_v30, %v257_v11  ;;  %v358_v29 = vmul.f32 %v3928_v27, %v317_v8  ;;  %3348 = vmatpush3.bf16.msra.mxu1 %v3347_v4  ;;  %v485_v59 = vadd.f32 %v469_v46, %v3784_v52  ;;  %v260_v4 = vmul.f32 %v3922_v12, %v3828_v13 }
 0x12c   :  { %3349 = vmatprep.subr.bf16.mxu1 %v5604_v10 }
 0x12d   :  { %v375_v50 = vmul.f32 %v3937_v38, %v358_v29  ;;  %v470_v54 = vmul.f32 %v4022_v5, %v3775_v47 }
 0x12e   :  { %v322_v31 = vpop.permute.xlu1 %321 }
 0x12f   :  { %v4035_v3 = vadd.f32 %v375_v50, %v258_v2  ;;  %v359_v55 = vmul.f32 %v3928_v27, %v322_v31  ;;  %v486_v11 = vadd.f32 %v470_v54, %v3789_v53  ;;  %v261_v50 = vmul.f32 %v3922_v12, %v3844_v22 }
 0x131   :  { %v376_v43 = vmul.f32 %v3937_v38, %v359_v55  ;;  %v3350_v49 = vpack.c.bf16 %v486_v11, %v485_v59  ;;  %v471_v56 = vmul.f32 %v4035_v3, %v3807_v57 }
 0x132   :  { %v327_v51 = vpop.permute.xlu1 %326 }
 0x133   :  { %v4041_v30 = vadd.f32 %v376_v43, %v259_v21  ;;  %v360_v8 = vmul.f32 %v3928_v27, %v327_v51  ;;  %3351 = vmatpush3.bf16.msra.mxu1 %v3350_v49  ;;  %v487_v31 = vadd.f32 %v471_v56, %v3819_v62  ;;  %v262_v49 = vmul.f32 %v3922_v12, %v3870_v39 }
 0x134   :  { %3352 = vmatprep.subr.bf16.mxu1 %v5604_v10 }
 0x135   :  { %v377_v2 = vmul.f32 %v3937_v38, %v360_v8  ;;  %v472_v29 = vmul.f32 %v4041_v30, %v3812_v58 }
 0x136   :  { %v332_v46 = vpop.permute.xlu1 %331 }
 0x137   :  { %v4054_v54 = vadd.f32 %v377_v2, %v260_v4  ;;  %v361_v13 = vmul.f32 %v3928_v27, %v332_v46  ;;  %v488_v21 = vadd.f32 %v472_v29, %v3839_v19  ;;  %v263_v2 = vmul.f32 %v3922_v12, %v3876_v41 }
 0x139   :  { %v378_v55 = vmul.f32 %v3937_v38, %v361_v13  ;;  %v3353_v59 = vpack.c.bf16 %v488_v21, %v487_v31  ;;  %v473_v22 = vmul.f32 %v4054_v54, %v3833_v17 }
 0x13a   :  { %v337_v11 = vpop.permute.xlu1 %336 }
 0x13b   :  { %v4060_v43 = vadd.f32 %v378_v55, %v261_v50  ;;  %v362_v51 = vmul.f32 %v3928_v27, %v337_v11  ;;  %3354 = vmatpush3.bf16.msra.mxu1 %v3353_v59  ;;  %v489_v46 = vadd.f32 %v473_v22, %v3858_v34  ;;  %v5606_v59 = vld [vmem:[#allocation14_spill] sm:$0xff]  ;;  %v5608_v22 = vmov 0.0  }
 0x13c   :  { %3355 = vmatprep.subr.bf16.mxu1 %v5604_v10 }
 0x13d   :  { %v379_v4 = vmul.f32 %v3937_v38, %v362_v51  ;;  %v474_v8 = vmul.f32 %v4060_v43, %v3849_v23  ;;  %v5607_v51 = vld [vmem:[#allocation16_spill] sm:$0xff] }
 0x13e   :  { %v342_v56 = vpop.permute.xlu1 %341 }
 0x13f   :  { %v4073_v29 = vadd.f32 %v379_v4, %v262_v49  ;;  %v363_v39 = vmul.f32 %v3928_v27, %v342_v56  ;;  %v490_v50 = vadd.f32 %v474_v8, %v3863_v36 }
 0x141   :  { %v380_v13 = vmul.f32 %v3937_v38, %v363_v39  ;;  %v3356_v31 = vpack.c.bf16 %v490_v50, %v489_v46  ;;  %v475_v55 = vmul.f32 %v4073_v29, %v3881_v42 }
 0x143   :  { %v4079_v21 = vadd.f32 %v380_v13, %v263_v2  ;;  %3357 = vmatpush3.bf16.msra.mxu1 %v3356_v31  ;;  %v491_v27 = vadd.f32 %v475_v55, %v3898_v60  ;;  %v603_v60 = vmul.f32 %v3963_v0, %v3922_v12  ;;  %v609_v0 = vmul.f32 %v4022_v5, %v3922_v12 }
 0x144   :  { %3358 = vmatprep.subr.bf16.mxu1 %v5604_v10 }
 0x145   :  { %5605 = vst [vmem:[#allocation17_spill] sm:$0xff] %v4079_v21  ;;  %v476_v41 = vmul.f32 %v4079_v21, %v3886_v48 }
 0x147   :  { %v492_v11 = vadd.f32 %v476_v41, %v5606_v59 }
 0x149   :  { %v3359_v49 = vpack.c.bf16 %v492_v11, %v491_v27 }
 0x14b   :  { %3360 = vmatpush3.bf16.msra.mxu1 %v3359_v49 }
 0x14c   :  { %3385 = vmatprep.subr.bf16.mxu1 %v5604_v10 }
 0x14e   :  { %3101 = vmatmul.mubr.f32.vlgmr.msra.gmra.mrb[0].mxu1 %v5607_v51 }
 0x14f   :  { %3170 = vmatprep.mubr.msk.f32.mxu1 %vm3555_vm0, %v5608_v22  ;;  %v602_v22 = vmul.f32 %v3954_v61, %v3922_v12  ;;  %v607_v61 = vmul.f32 %v4003_v33, %v3922_v12 }
 0x18b   :  { %v584_v4 = vpop.trf.xlu1 }
 0x18c   :  { %618 = vperm.xlu1 %3513, %v584_v4  }
 0x18f   :  { %v585_v8 = vpop.trf.xlu1 }
 0x190   :  { %623 = vperm.xlu0 %3512, %v585_v8  }
 0x193   :  { %v586_v56 = vpop.trf.xlu1 }
 0x194   :  { %628 = vperm.xlu0 %3512, %v586_v56  }
 0x197   :  { %v587_v2 = vpop.trf.xlu1 }
 0x198   :  { %633 = vperm.xlu0 %3512, %v587_v2  }
 0x19b   :  { %v588_v39 = vpop.trf.xlu1 }
 0x19c   :  { %638 = vperm.xlu0 %3512, %v588_v39  }
 0x19f   :  { %v589_v46 = vpop.trf.xlu1 }
 0x1a0   :  { %643 = vperm.xlu0 %3512, %v589_v46  }
 0x1a3   :  { %v590_v50 = vpop.trf.xlu1 }
 0x1a4   :  { %648 = vperm.xlu0 %3512, %v590_v50   ;;  %v2890_v50 = vld [vmem:[%s5543_s1 + $0x1] sm:$0x1] }
 0x1a7   :  { %v591_v13 = vpop.trf.xlu1 }
 0x1a8   :  { %653 = vperm.xlu0 %3512, %v591_v13  }
 0x1ab   :  { %v592_v31 = vpop.trf.xlu1 }
 0x1ac   :  { %658 = vperm.xlu0 %3512, %v592_v31  }
 0x1af   :  { %v593_v55 = vpop.trf.xlu1 }
 0x1b0   :  { %663 = vperm.xlu0 %3512, %v593_v55  }
 0x1b3   :  { %v594_v41 = vpop.trf.xlu1 }
 0x1b4   :  { %668 = vperm.xlu0 %3512, %v594_v41  }
 0x1b7   :  { %v595_v27 = vpop.trf.xlu1 }
 0x1b8   :  { %673 = vperm.xlu0 %3512, %v595_v27  }
 0x1bb   :  { %v596_v11 = vpop.trf.xlu1 }
 0x1bc   :  { %678 = vperm.xlu0 %3512, %v596_v11  }
 0x1bf   :  { %v597_v49 = vpop.trf.xlu1 }
 0x1c0   :  { %683 = vperm.xlu0 %3512, %v597_v49  }
 0x1c3   :  { %v598_v51 = vpop.trf.xlu1 }
 0x1c4   :  { %688 = vperm.xlu0 %3512, %v598_v51   ;;  %v600_v51 = vmul.f32 %v3956_v9, %v3922_v12  ;;  %v608_v9 = vmul.f32 %v4016_v32, %v3922_v12 }
 0x1c7   :  { %v599_v4 = vpop.trf.xlu1 }
 0x1c8   :  { %693 = vperm.xlu0 %3512, %v599_v4   ;;  %v601_v4 = vmul.f32 %v3952_v63, %v3922_v12 }
 0x20b   :  { %v619_v63 = vpop.permute.xlu1 %618 }
 0x20f   :  { %v624_v8 = vpop.permute.xlu0 %623 }
 0x213   :  { %v629_v56 = vpop.permute.xlu0 %628 }
 0x217   :  { %v634_v2 = vpop.permute.xlu0 %633 }
 0x21b   :  { %v639_v39 = vpop.permute.xlu0 %638 }
 0x21f   :  { %v644_v46 = vpop.permute.xlu0 %643 }
 0x221   :  { %v561_v13 = vpop.f32.mrb[0].mxu1 }
 0x222   :  { %v562_v55 = vadd.f32 %v2890_v50, %v561_v13  ;;  %v3102_v41 = vpop.f32.mrb[1].mxu1  ;;  %v604_v50 = vmul.f32 %v3977_v20, %v3922_v12  ;;  %v605_v13 = vmul.f32 %v3984_v18, %v3922_v12  ;;  %v610_v18 = vmul.f32 %v4035_v3, %v3922_v12 }
 0x223   :  { %v4095_v31 = vpop.permute.xlu0 %648 }
 0x224   :  { %3516 = vtanh.f32 %v562_v55  ;;  %v5610_v55 = vld [vmem:[#allocation15_spill] sm:$0xff] }
 0x227   :  { %v654_v27 = vpop.permute.xlu0 %653 }
 0x22b   :  { %v659_v11 = vpop.permute.xlu0 %658 }
 0x22e   :  { %v4097_v49 = vpop.eup %3516 }
 0x22f   :  { %5609 = vst [vmem:[#allocation16_spill] sm:$0xff] %v4097_v49  ;;  %v664_v59 = vpop.permute.xlu0 %663  ;;  %v4113_v41 = vrot.slane %v4097_v49, %v5610_v55  ;;  %567 = vst [vmem:[#allocation3 + $0x1] sm:$0x1] %v4097_v49  ;;  %919 = vxpose.xlu0.b32.start.end [1/1] (short) %v4097_v49, 128 }
 0x231   :  { %v707_v20 = vmul.f32 %v4113_v41, %v654_v27  ;;  %v708_v55 = vmul.f32 %v4113_v41, %v659_v11  ;;  %v709_v48 = vmul.f32 %v4113_v41, %v664_v59  ;;  %v700_v49 = vmul.f32 %v4113_v41, %v619_v63 }
 0x232   :  { %v701_v33 = vmul.f32 %v4113_v41, %v624_v8  ;;  %v702_v21 = vmul.f32 %v4113_v41, %v629_v56  ;;  %v703_v32 = vmul.f32 %v4113_v41, %v634_v2  ;;  %v704_v5 = vmul.f32 %v4113_v41, %v639_v39 }
 0x233   :  { %v669_v42 = vpop.permute.xlu0 %668  ;;  %v723_v36 = vmul.f32 %v707_v20, %v3937_v38  ;;  %v724_v3 = vmul.f32 %v708_v55, %v3937_v38  ;;  %v725_v27 = vmul.f32 %v709_v48, %v3937_v38  ;;  %v716_v59 = vmul.f32 %v700_v49, %v3937_v38 }
 0x234   :  { %v710_v11 = vmul.f32 %v4113_v41, %v669_v42  ;;  %v717_v63 = vmul.f32 %v701_v33, %v3937_v38  ;;  %v718_v8 = vmul.f32 %v702_v21, %v3937_v38  ;;  %v719_v56 = vmul.f32 %v703_v32, %v3937_v38  ;;  %v5611_v32 = vld [vmem:[#allocation8_spill] sm:$0xff] }
 0x235   :  { %v4141_v34 = vadd.f32 %v723_v36, %v607_v61  ;;  %v4143_v2 = vadd.f32 %v724_v3, %v608_v9  ;;  %v4145_v39 = vadd.f32 %v725_v27, %v609_v0  ;;  %v4148_v48 = vadd.f32 %v716_v59, %v600_v51  ;;  %v5612_v3 = vld [vmem:[#allocation6_spill] sm:$0xff]  ;;  %v5613_v27 = vld [vmem:[#allocation7_spill] sm:$0xff] }
 0x236   :  { %v726_v55 = vmul.f32 %v710_v11, %v3937_v38  ;;  %v4150_v42 = vadd.f32 %v717_v63, %v601_v4  ;;  %v4152_v49 = vadd.f32 %v718_v8, %v602_v22  ;;  %v4154_v33 = vadd.f32 %v719_v56, %v603_v60 }
 0x237   :  { %v674_v20 = vpop.permute.xlu0 %673  ;;  %v705_v61 = vmul.f32 %v4113_v41, %v644_v46  ;;  %v720_v9 = vmul.f32 %v704_v5, %v3937_v38  ;;  %v606_v0 = vmul.f32 %v3997_v1, %v3922_v12  ;;  %v611_v51 = vmul.f32 %v4041_v30, %v3922_v12 }
 0x238   :  { %v4156_v21 = vadd.f32 %v726_v55, %v610_v18  ;;  %v711_v36 = vmul.f32 %v4113_v41, %v674_v20  ;;  %v812_v22 = vmul.f32 %v4148_v48, %v3631_v6  ;;  %v813_v60 = vmul.f32 %v4150_v42, %v3636_v7 }
 0x239   :  { %v612_v18 = vmul.f32 %v4054_v54, %v3922_v12  ;;  %v814_v46 = vmul.f32 %v4152_v49, %v3668_v16  ;;  %v815_v1 = vmul.f32 %v4154_v33, %v5611_v32  ;;  %v721_v6 = vmul.f32 %v705_v61, %v3937_v38 }
 0x23a   :  { %v727_v4 = vmul.f32 %v711_v36, %v3937_v38  ;;  %v828_v30 = vadd.f32 %v812_v22, %v5612_v3  ;;  %v829_v11 = vadd.f32 %v813_v60, %v5613_v27  ;;  %v4179_v59 = vadd.f32 %v720_v9, %v604_v50 }
 0x23b   :  { %v679_v5 = vpop.permute.xlu0 %678  ;;  %v830_v54 = vadd.f32 %v814_v46, %v3658_v14  ;;  %v831_v16 = vadd.f32 %v815_v1, %v3663_v15  ;;  %v4186_v56 = vadd.f32 %v721_v6, %v605_v13  ;;  %v706_v20 = vmul.f32 %v4113_v41, %v4095_v31  ;;  %v5615_v6 = vld [vmem:[#allocation10_spill] sm:$0xff] }
 0x23c   :  { %v4181_v7 = vadd.f32 %v727_v4, %v611_v51  ;;  %v712_v63 = vmul.f32 %v4113_v41, %v679_v5  ;;  %v3362_v8 = vpack.c.bf16 %v829_v11, %v828_v30  ;;  %v816_v55 = vmul.f32 %v4179_v59, %v3707_v26 }
 0x23d   :  { %v3365_v36 = vpack.c.bf16 %v831_v16, %v830_v54  ;;  %v819_v61 = vmul.f32 %v4141_v34, %v3739_v37  ;;  %v820_v14 = vmul.f32 %v4143_v2, %v3759_v44  ;;  %v817_v15 = vmul.f32 %v4186_v56, %v3713_v28 }
 0x23e   :  { %v728_v50 = vmul.f32 %v712_v63, %v3937_v38  ;;  %3363 = vmatpush3.bf16.msra.mxu0 %v3362_v8  ;;  %v832_v13 = vadd.f32 %v816_v55, %v3697_v24  ;;  %v722_v26 = vmul.f32 %v706_v20, %v3937_v38  ;;  %v821_v31 = vmul.f32 %v4145_v39, %v3775_v47  ;;  %v5617_v55 = vld [vmem:[#allocation11_spill] sm:$0xff]  ;;  %v5618_v20 = vld [vmem:[#allocation12_spill] sm:$0xff] }
 0x23f   :  { %v684_v9 = vpop.permute.xlu0 %683  ;;  %3364 = vmatprep.subr.bf16.mxu0 %v5604_v10  ;;  %v836_v37 = vadd.f32 %v820_v14, %v3784_v52  ;;  %v833_v44 = vadd.f32 %v817_v15, %v3702_v25  ;;  %v822_v24 = vmul.f32 %v4156_v21, %v3807_v57  ;;  %v613_v47 = vmul.f32 %v4060_v43, %v3922_v12  ;;  %v5620_v14 = vld [vmem:[#allocation14_spill] sm:$0xff] }
 0x240   :  { %v4203_v51 = vadd.f32 %v728_v50, %v612_v18  ;;  %v713_v22 = vmul.f32 %v4113_v41, %v684_v9  ;;  %v4209_v60 = vadd.f32 %v722_v26, %v606_v0  ;;  %v837_v28 = vadd.f32 %v821_v31, %v3789_v53 }
 0x241   :  { %v835_v18 = vadd.f32 %v819_v61, %v3765_v45  ;;  %v823_v46 = vmul.f32 %v4181_v7, %v3812_v58  ;;  %v3368_v25 = vpack.c.bf16 %v833_v44, %v832_v13  ;;  %v838_v45 = vadd.f32 %v822_v24, %v3819_v62  ;;  %v5621_v13 = vld [vmem:[#allocation16_spill] sm:$0xff] }
 0x242   :  { %v729_v4 = vmul.f32 %v713_v22, %v3937_v38  ;;  %3366 = vmatpush3.bf16.msra.mxu0 %v3365_v36  ;;  %v818_v0 = vmul.f32 %v4209_v60, %v3733_v35  ;;  %v3374_v53 = vpack.c.bf16 %v837_v28, %v836_v37  ;;  %v824_v57 = vmul.f32 %v4203_v51, %v3833_v17  ;;  %v5619_v36 = vld [vmem:[#allocation13_spill] sm:$0xff] }
 0x243   :  { %v689_v52 = vpop.permute.xlu0 %688  ;;  %3367 = vmatprep.subr.bf16.mxu0 %v5604_v10  ;;  %v839_v58 = vadd.f32 %v823_v46, %v3839_v19  ;;  %v614_v5 = vmul.f32 %v4073_v29, %v3922_v12  ;;  %v5614_v19 = vld [vmem:[#allocation9_spill] sm:$0xff]  ;;  %v5622_v26 = vmov 0.0  }
 0x244   :  { %v4224_v32 = vadd.f32 %v729_v4, %v613_v47  ;;  %v714_v43 = vmul.f32 %v4113_v41, %v689_v52  ;;  %v834_v1 = vadd.f32 %v818_v0, %v3745_v40  ;;  %v840_v40 = vadd.f32 %v824_v57, %v5614_v19  ;;  %v5616_v29 = vld [vmem:[#allocation17_spill] sm:$0xff] }
 0x245   :  { %v3377_v3 = vpack.c.bf16 %v839_v58, %v838_v45  ;;  %v615_v54 = vmul.f32 %v5616_v29, %v3922_v12  ;;  %v2891_v45 = vld [vmem:[%s5543_s1 + $0x2] sm:$0x1] }
 0x246   :  { %v730_v35 = vmul.f32 %v714_v43, %v3937_v38  ;;  %v825_v17 = vmul.f32 %v4224_v32, %v3849_v23  ;;  %3369 = vmatpush3.bf16.msra.mxu0 %v3368_v25  ;;  %v3371_v27 = vpack.c.bf16 %v835_v18, %v834_v1 }
 0x247   :  { %v694_v30 = vpop.permute.xlu0 %693  ;;  %3370 = vmatprep.subr.bf16.mxu0 %v5604_v10 }
 0x248   :  { %v4236_v11 = vadd.f32 %v730_v35, %v614_v5  ;;  %v715_v62 = vmul.f32 %v4113_v41, %v694_v30  ;;  %v841_v63 = vadd.f32 %v825_v17, %v5615_v6 }
 0x24a   :  { %v731_v16 = vmul.f32 %v715_v62, %v3937_v38  ;;  %v3380_v8 = vpack.c.bf16 %v841_v63, %v840_v40  ;;  %3372 = vmatpush3.bf16.msra.mxu0 %v3371_v27  ;;  %v826_v41 = vmul.f32 %v4236_v11, %v5617_v55  ;;  %v5623_v27 = vld [vmem:[#allocation15_spill] sm:$0xff]  ;;  %v955_v55 = vmul.f32 %v4179_v59, %v3922_v12  ;;  %v4294_v59 = vld [vmem:[%s5546_s4] sm:$0xff] }
 0x24b   :  { %3373 = vmatprep.subr.bf16.mxu0 %v5604_v10 }
 0x24c   :  { %v4245_v23 = vadd.f32 %v731_v16, %v615_v54  ;;  %v842_v61 = vadd.f32 %v826_v41, %v5619_v36  ;;  %v951_v16 = vmul.f32 %v4148_v48, %v3922_v12  ;;  %v953_v48 = vmul.f32 %v4152_v49, %v3922_v12 }
 0x24e   :  { %v827_v50 = vmul.f32 %v4245_v23, %v5618_v20  ;;  %3375 = vmatpush3.bf16.msra.mxu0 %v3374_v53 }
 0x24f   :  { %3376 = vmatprep.subr.bf16.mxu0 %v5604_v10 }
 0x250   :  { %v843_v9 = vadd.f32 %v827_v50, %v5620_v14  ;;  %v952_v14 = vmul.f32 %v4150_v42, %v3922_v12 }
 0x252   :  { %v3383_v15 = vpack.c.bf16 %v843_v9, %v842_v61  ;;  %3378 = vmatpush3.bf16.msra.mxu0 %v3377_v3 }
 0x253   :  { %3379 = vmatprep.subr.bf16.mxu0 %v5604_v10 }
 0x256   :  { %3381 = vmatpush3.bf16.msra.mxu0 %v3380_v8  ;;  %v954_v8 = vmul.f32 %v4154_v33, %v3922_v12 }
 0x257   :  { %3382 = vmatprep.subr.bf16.mxu0 %v5604_v10 }
 0x25a   :  { %3384 = vmatpush3.bf16.msra.mxu0 %v3383_v15  ;;  %v4300_v15 = vld [vmem:[%s5546_s4 + $0x18] sm:$0xff] }
 0x25b   :  { %3409 = vmatprep.subr.bf16.mxu0 %v5604_v10 }
 0x25d   :  { %3136 = vmatmul.mubr.f32.vlgmr.msra.gmra.mrb[2].mxu0 %v5621_v13 }
 0x25e   :  { %3205 = vmatprep.mubr.msk.f32.mxu0 %vm3555_vm0, %v5622_v26 }
 0x2af   :  { %v935_v31 = vpop.trf.xlu0 }
 0x2b0   :  { %969 = vperm.xlu1 %3513, %v935_v31  }
 0x2b3   :  { %v936_v22 = vpop.trf.xlu0 }
 0x2b4   :  { %974 = vperm.xlu0 %3512, %v936_v22   ;;  %v4312_v22 = vld [vmem:[%s5546_s4 + $0x8] sm:$0xff] }
 0x2b7   :  { %v937_v37 = vpop.trf.xlu0 }
 0x2b8   :  { %979 = vperm.xlu1 %3513, %v937_v37   ;;  %v4317_v37 = vld [vmem:[%s5546_s4 + $0x10] sm:$0xff] }
 0x2bb   :  { %v938_v44 = vpop.trf.xlu0 }
 0x2bc   :  { %984 = vperm.xlu1 %3513, %v938_v44  }
 0x2bf   :  { %v939_v28 = vpop.trf.xlu0 }
 0x2c0   :  { %989 = vperm.xlu1 %3513, %v939_v28   ;;  %v4324_v28 = vld [vmem:[%s5545_s3] sm:$0xff] }
 0x2c3   :  { %v940_v24 = vpop.trf.xlu0 }
 0x2c4   :  { %994 = vperm.xlu1 %3513, %v940_v24  }
 0x2c7   :  { %v941_v47 = vpop.trf.xlu0 }
 0x2c8   :  { %999 = vperm.xlu1 %3513, %v941_v47   ;;  %v4331_v47 = vld [vmem:[%s5545_s3 + $0x18] sm:$0xff] }
 0x2cb   :  { %v942_v4 = vpop.trf.xlu0 }
 0x2cc   :  { %1004 = vperm.xlu1 %3513, %v942_v4   ;;  %v956_v4 = vmul.f32 %v4186_v56, %v3922_v12  ;;  %v4353_v56 = vld [vmem:[%s5546_s4 + $0x20] sm:$0xff] }
 0x2cf   :  { %v943_v18 = vpop.trf.xlu0 }
 0x2d0   :  { %1009 = vperm.xlu1 %3513, %v943_v18  }
 0x2d3   :  { %v944_v46 = vpop.trf.xlu0 }
 0x2d4   :  { %1014 = vperm.xlu1 %3513, %v944_v46   ;;  %v4339_v46 = vld [vmem:[%s5545_s3 + $0x8] sm:$0xff] }
 0x2d7   :  { %v945_v52 = vpop.trf.xlu0 }
 0x2d8   :  { %1019 = vperm.xlu1 %3513, %v945_v52  }
 0x2db   :  { %v946_v25 = vpop.trf.xlu0 }
 0x2dc   :  { %1024 = vperm.xlu1 %3513, %v946_v25   ;;  %v4346_v25 = vld [vmem:[%s5545_s3 + $0x10] sm:$0xff] }
 0x2df   :  { %v947_v0 = vpop.trf.xlu0 }
 0x2e0   :  { %1029 = vperm.xlu1 %3513, %v947_v0  }
 0x2e3   :  { %v948_v53 = vpop.trf.xlu0 }
 0x2e4   :  { %1034 = vperm.xlu1 %3513, %v948_v53  }
 0x2e7   :  { %v949_v57 = vpop.trf.xlu0 }
 0x2e8   :  { %1039 = vperm.xlu1 %3513, %v949_v57  }
 0x2eb   :  { %v950_v43 = vpop.trf.xlu0 }
 0x2ec   :  { %1044 = vperm.xlu1 %3513, %v950_v43  }
 0x32f   :  { %v970_v35 = vpop.permute.xlu1 %969 }
 0x330   :  { %v912_v58 = vpop.f32.mrb[2].mxu0 }
 0x331   :  { %v913_v1 = vadd.f32 %v2891_v45, %v912_v58  ;;  %v3137_v5 = vpop.f32.mrb[3].mxu0  ;;  %v4362_v45 = vld [vmem:[%s5546_s4 + $0x28] sm:$0xff] }
 0x333   :  { %3518 = vtanh.f32 %v913_v1  ;;  %v975_v19 = vpop.permute.xlu0 %974 }
 0x337   :  { %v980_v3 = vpop.permute.xlu1 %979 }
 0x33b   :  { %v985_v17 = vpop.permute.xlu1 %984 }
 0x33d   :  { %v4264_v30 = vpop.eup %3518 }
 0x33e   :  { %v4268_v62 = vrot.slane %v4264_v30, %v5623_v27  ;;  %918 = vst [vmem:[#allocation3 + $0x2] sm:$0x1] %v4264_v30  ;;  %1270 = vxpose.xlu1.b32.start.end [1/1] (short) %v4264_v30, 128 }
 0x33f   :  { %v990_v40 = vpop.permute.xlu1 %989 }
 0x340   :  { %v1054_v6 = vmul.f32 %v4268_v62, %v985_v17  ;;  %v1055_v63 = vmul.f32 %v4268_v62, %v990_v40  ;;  %v1051_v29 = vmul.f32 %v4268_v62, %v970_v35  ;;  %v1052_v54 = vmul.f32 %v4268_v62, %v975_v19  ;;  %v4374_v19 = vld [vmem:[%s5545_s3 + $0x20] sm:$0xff]  ;;  %v4379_v40 = vld [vmem:[%s5545_s3 + $0x28] sm:$0xff] }
 0x341   :  { %v1053_v41 = vmul.f32 %v4268_v62, %v980_v3 }
 0x342   :  { %v1070_v20 = vmul.f32 %v1054_v6, %v3937_v38  ;;  %v1071_v50 = vmul.f32 %v1055_v63, %v3937_v38  ;;  %v1067_v36 = vmul.f32 %v1051_v29, %v3937_v38  ;;  %v1068_v61 = vmul.f32 %v1052_v54, %v3937_v38 }
 0x343   :  { %v995_v33 = vpop.permute.xlu1 %994  ;;  %v1069_v9 = vmul.f32 %v1053_v41, %v3937_v38  ;;  %v957_v63 = vmul.f32 %v4209_v60, %v3922_v12  ;;  %v4396_v60 = vld [vmem:[%s5546_s4 + $0x30] sm:$0xff] }
 0x344   :  { %v4302_v13 = vadd.f32 %v1070_v20, %v954_v8  ;;  %v4304_v31 = vadd.f32 %v1071_v50, %v955_v55  ;;  %v1056_v42 = vmul.f32 %v4268_v62, %v995_v33  ;;  %v4307_v49 = vadd.f32 %v1067_v36, %v951_v16 }
 0x345   :  { %v4319_v44 = vadd.f32 %v1068_v61, %v952_v14  ;;  %v4326_v24 = vadd.f32 %v1069_v9, %v953_v48  ;;  %v958_v61 = vmul.f32 %v4141_v34, %v3922_v12  ;;  %v4405_v9 = vld [vmem:[%s5546_s4 + $0x38] sm:$0xff]  ;;  %v4415_v34 = vld [vmem:[%s5545_s3 + $0x30] sm:$0xff] }
 0x346   :  { %v1072_v18 = vmul.f32 %v1056_v42, %v3937_v38  ;;  %v1163_v52 = vmul.f32 %v4294_v59, %v4307_v49  ;;  %v1166_v0 = vmul.f32 %v4300_v15, %v4302_v13  ;;  %v1167_v6 = vmul.f32 %v4353_v56, %v4304_v31 }
 0x347   :  { %v1000_v53 = vpop.permute.xlu1 %999  ;;  %v1164_v57 = vmul.f32 %v4312_v22, %v4319_v44  ;;  %v1165_v43 = vmul.f32 %v4317_v37, %v4326_v24 }
 0x348   :  { %v4364_v58 = vadd.f32 %v1072_v18, %v956_v4  ;;  %v1057_v1 = vmul.f32 %v4268_v62, %v1000_v53  ;;  %v1179_v5 = vadd.f32 %v1163_v52, %v4324_v28  ;;  %v1182_v35 = vadd.f32 %v1166_v0, %v4331_v47  ;;  %v4420_v52 = vld [vmem:[%s5545_s3 + $0x38] sm:$0xff] }
 0x349   :  { %v1180_v3 = vadd.f32 %v1164_v57, %v4339_v46  ;;  %v1181_v17 = vadd.f32 %v1165_v43, %v4346_v25  ;;  %v1183_v50 = vadd.f32 %v1167_v6, %v4374_v19  ;;  %v959_v0 = vmul.f32 %v4143_v2, %v3922_v12  ;;  %v4436_v2 = vld [vmem:[%s5546_s4 + $0x40] sm:$0xff] }
 0x34a   :  { %v1073_v29 = vmul.f32 %v1057_v1, %v3937_v38  ;;  %v1168_v54 = vmul.f32 %v4362_v45, %v4364_v58 }
 0x34b   :  { %v1005_v16 = vpop.permute.xlu1 %1004  ;;  %v3386_v8 = vpack.c.bf16 %v1180_v3, %v1179_v5  ;;  %v3389_v55 = vpack.c.bf16 %v1182_v35, %v1181_v17  ;;  %v960_v17 = vmul.f32 %v4145_v39, %v3922_v12  ;;  %v4455_v39 = vld [vmem:[%s5545_s3 + $0x40] sm:$0xff] }
 0x34c   :  { %v4388_v41 = vadd.f32 %v1073_v29, %v957_v63  ;;  %v1058_v20 = vmul.f32 %v4268_v62, %v1005_v16  ;;  %v1184_v36 = vadd.f32 %v1168_v54, %v4379_v40  ;;  %v4445_v54 = vld [vmem:[%s5546_s4 + $0x48] sm:$0xff] }
 0x34d   :  { %3387 = vmatpush3.bf16.msra.mxu1 %v3386_v8 }
 0x34e   :  { %v1074_v14 = vmul.f32 %v1058_v20, %v3937_v38  ;;  %3388 = vmatprep.subr.bf16.mxu1 %v5604_v10  ;;  %v3392_v48 = vpack.c.bf16 %v1184_v36, %v1183_v50  ;;  %v1169_v18 = vmul.f32 %v4396_v60, %v4388_v41  ;;  %v4460_v20 = vld [vmem:[%s5545_s3 + $0x48] sm:$0xff]  ;;  %v961_v50 = vmul.f32 %v4156_v21, %v3922_v12  ;;  %v4476_v21 = vld [vmem:[%s5546_s4 + $0x50] sm:$0xff] }
 0x34f   :  { %v1010_v33 = vpop.permute.xlu1 %1009 }
 0x350   :  { %v4407_v42 = vadd.f32 %v1074_v14, %v958_v61  ;;  %v1059_v4 = vmul.f32 %v4268_v62, %v1010_v33  ;;  %v1185_v35 = vadd.f32 %v1169_v18, %v4415_v34 }
 0x351   :  { %3390 = vmatpush3.bf16.msra.mxu1 %v3389_v55 }
 0x352   :  { %v1075_v53 = vmul.f32 %v1059_v4, %v3937_v38  ;;  %3391 = vmatprep.subr.bf16.mxu1 %v5604_v10  ;;  %v1170_v57 = vmul.f32 %v4405_v9, %v4407_v42 }
 0x353   :  { %v1015_v43 = vpop.permute.xlu1 %1014 }
 0x354   :  { %v4428_v1 = vadd.f32 %v1075_v53, %v959_v0  ;;  %v1060_v5 = vmul.f32 %v4268_v62, %v1015_v43  ;;  %v1186_v3 = vadd.f32 %v1170_v57, %v4420_v52  ;;  %v962_v0 = vmul.f32 %v4181_v7, %v3922_v12  ;;  %v4495_v7 = vld [vmem:[%s5545_s3 + $0x50] sm:$0xff] }
 0x355   :  { %3393 = vmatpush3.bf16.msra.mxu1 %v3392_v48 }
 0x356   :  { %v1076_v6 = vmul.f32 %v1060_v5, %v3937_v38  ;;  %3394 = vmatprep.subr.bf16.mxu1 %v5604_v10  ;;  %v3395_v63 = vpack.c.bf16 %v1186_v3, %v1185_v35  ;;  %v1171_v55 = vmul.f32 %v4436_v2, %v4428_v1  ;;  %v4484_v5 = vld [vmem:[%s5546_s4 + $0x58] sm:$0xff] }
 0x357   :  { %v1020_v29 = vpop.permute.xlu1 %1019 }
 0x358   :  { %v4447_v16 = vadd.f32 %v1076_v6, %v960_v17  ;;  %v1061_v8 = vmul.f32 %v4268_v62, %v1020_v29  ;;  %v1187_v4 = vadd.f32 %v1171_v55, %v4455_v39  ;;  %v4500_v6 = vld [vmem:[%s5545_s3 + $0x58] sm:$0xff] }
 0x359   :  { %3396 = vmatpush3.bf16.msra.mxu1 %v3395_v63  ;;  %v963_v63 = vmul.f32 %v4203_v51, %v3922_v12  ;;  %v964_v51 = vmul.f32 %v4224_v32, %v3922_v12  ;;  %v4534_v32 = vld [vmem:[%s5545_s3 + $0x60] sm:$0xff] }
 0x35a   :  { %v1077_v36 = vmul.f32 %v1061_v8, %v3937_v38  ;;  %3397 = vmatprep.subr.bf16.mxu1 %v5604_v10  ;;  %v1172_v61 = vmul.f32 %v4445_v54, %v4447_v16  ;;  %5625 = vst [vmem:[#allocation6_spill] sm:$0xff] %v4534_v32 }
 0x35b   :  { %v1025_v14 = vpop.permute.xlu1 %1024 }
 0x35c   :  { %v4468_v48 = vadd.f32 %v1077_v36, %v961_v50  ;;  %v1062_v33 = vmul.f32 %v4268_v62, %v1025_v14  ;;  %v1188_v18 = vadd.f32 %v1172_v61, %v4460_v20 }
 0x35e   :  { %v1078_v53 = vmul.f32 %v1062_v33, %v3937_v38  ;;  %v3398_v57 = vpack.c.bf16 %v1188_v18, %v1187_v4  ;;  %v1173_v17 = vmul.f32 %v4476_v21, %v4468_v48  ;;  %v4515_v33 = vld [vmem:[%s5546_s4 + $0x60] sm:$0xff] }
 0x35f   :  { %v1030_v43 = vpop.permute.xlu1 %1029 }
 0x360   :  { %v4486_v35 = vadd.f32 %v1078_v53, %v962_v0  ;;  %v1063_v3 = vmul.f32 %v4268_v62, %v1030_v43  ;;  %3399 = vmatpush3.bf16.msra.mxu1 %v3398_v57  ;;  %v1189_v61 = vadd.f32 %v1173_v17, %v4495_v7  ;;  %v4523_v53 = vld [vmem:[%s5546_s4 + $0x68] sm:$0xff] }
 0x361   :  { %3400 = vmatprep.subr.bf16.mxu1 %v5604_v10  ;;  %5624 = vst [vmem:[#allocation8_spill] sm:$0xff] %v4523_v53  ;;  %v4539_v17 = vld [vmem:[%s5545_s3 + $0x68] sm:$0xff] }
 0x362   :  { %v1079_v29 = vmul.f32 %v1063_v3, %v3937_v38  ;;  %v1174_v8 = vmul.f32 %v4484_v5, %v4486_v35  ;;  %5626 = vst [vmem:[#allocation7_spill] sm:$0xff] %v4539_v17 }
 0x363   :  { %v1035_v55 = vpop.permute.xlu1 %1034 }
 0x364   :  { %v4507_v50 = vadd.f32 %v1079_v29, %v963_v63  ;;  %v1064_v36 = vmul.f32 %v4268_v62, %v1035_v55  ;;  %v1190_v14 = vadd.f32 %v1174_v8, %v4500_v6  ;;  %v965_v63 = vmul.f32 %v4236_v11, %v3922_v12 }
 0x365   :  { %v966_v11 = vmul.f32 %v4245_v23, %v3922_v12  ;;  %v4572_v23 = vld [vmem:[%s5545_s3 + $0x70] sm:$0xff] }
 0x366   :  { %v1080_v4 = vmul.f32 %v1064_v36, %v3937_v38  ;;  %v3401_v18 = vpack.c.bf16 %v1190_v14, %v1189_v61  ;;  %v1175_v3 = vmul.f32 %v4515_v33, %v4507_v50  ;;  %5630 = vst [vmem:[#allocation11_spill] sm:$0xff] %v4572_v23 }
 0x367   :  { %v1040_v0 = vpop.permute.xlu1 %1039 }
 0x368   :  { %v4525_v57 = vadd.f32 %v1080_v4, %v964_v51  ;;  %v1065_v43 = vmul.f32 %v4268_v62, %v1040_v0  ;;  %3402 = vmatpush3.bf16.msra.mxu1 %v3401_v18  ;;  %v1191_v14 = vadd.f32 %v1175_v3, %v4534_v32  ;;  %v4554_v4 = vld [vmem:[%s5546_s4 + $0x70] sm:$0xff] }
 0x369   :  { %3403 = vmatprep.subr.bf16.mxu1 %v5604_v10  ;;  %5627 = vst [vmem:[#allocation9_spill] sm:$0xff] %v4554_v4 }
 0x36a   :  { %v1081_v29 = vmul.f32 %v1065_v43, %v3937_v38  ;;  %v1176_v8 = vmul.f32 %v4523_v53, %v4525_v57  ;;  %v4562_v43 = vld [vmem:[%s5546_s4 + $0x78] sm:$0xff] }
 0x36b   :  { %v1045_v55 = vpop.permute.xlu1 %1044  ;;  %5628 = vst [vmem:[#allocation10_spill] sm:$0xff] %v4562_v43 }
 0x36c   :  { %v4546_v36 = vadd.f32 %v1081_v29, %v965_v63  ;;  %v1066_v61 = vmul.f32 %v4268_v62, %v1045_v55  ;;  %v1192_v51 = vadd.f32 %v1176_v8, %v4539_v17  ;;  %v4577_v63 = vld [vmem:[%s5545_s3 + $0x78] sm:$0xff] }
 0x36d   :  { %5631 = vst [vmem:[#allocation12_spill] sm:$0xff] %v4577_v63 }
 0x36e   :  { %v1082_v18 = vmul.f32 %v1066_v61, %v3937_v38  ;;  %v3404_v0 = vpack.c.bf16 %v1192_v51, %v1191_v14  ;;  %v1177_v3 = vmul.f32 %v4554_v4, %v4546_v36  ;;  %v1305_v4 = vmul.f32 %v4302_v13, %v3922_v12 }
 0x36f   :  { %v1310_v13 = vmul.f32 %v4428_v1, %v3922_v12 }
 0x370   :  { %v4564_v62 = vadd.f32 %v1082_v18, %v966_v11  ;;  %3405 = vmatpush3.bf16.msra.mxu1 %v3404_v0  ;;  %v1193_v8 = vadd.f32 %v1177_v3, %v4572_v23 }
 0x371   :  { %3406 = vmatprep.subr.bf16.mxu1 %v5604_v10 }
 0x372   :  { %5629 = vst [vmem:[#allocation17_spill] sm:$0xff] %v4564_v62  ;;  %v1178_v29 = vmul.f32 %v4562_v43, %v4564_v62  ;;  %v1304_v43 = vmul.f32 %v4326_v24, %v3922_v12  ;;  %v1309_v24 = vmul.f32 %v4407_v42, %v3922_v12 }
 0x374   :  { %v1194_v55 = vadd.f32 %v1178_v29, %v4577_v63 }
 0x376   :  { %v3407_v61 = vpack.c.bf16 %v1194_v55, %v1193_v8 }
 0x378   :  { %3408 = vmatpush3.bf16.msra.mxu1 %v3407_v61 }
 0x379   :  { %3433 = vmatprep.subr.bf16.mxu1 %v5604_v10 }
 0x37b   :  { %3171 = vmatmul.mubr.f32.vlgmr.msra.gmra.mrb[2].mxu1 %v4264_v30 }
 0x37c   :  { %3240 = vmatprep.mubr.msk.f32.mxu1 %vm3555_vm0, %v5622_v26 }
 0x3be   :  { %v1286_v14 = vpop.trf.xlu1 }
 0x3bf   :  { %1320 = vperm.xlu1 %3513, %v1286_v14  }
 0x3c2   :  { %v1287_v51 = vpop.trf.xlu1 }
 0x3c3   :  { %1325 = vperm.xlu0 %3512, %v1287_v51  }
 0x3c6   :  { %v1288_v11 = vpop.trf.xlu1 }
 0x3c7   :  { %1330 = vperm.xlu0 %3512, %v1288_v11  }
 0x3ca   :  { %v1289_v18 = vpop.trf.xlu1 }
 0x3cb   :  { %1335 = vperm.xlu0 %3512, %v1289_v18  }
 0x3ce   :  { %v1290_v0 = vpop.trf.xlu1 }
 0x3cf   :  { %1340 = vperm.xlu0 %3512, %v1290_v0  }
 0x3d2   :  { %v1291_v3 = vpop.trf.xlu1 }
 0x3d3   :  { %1345 = vperm.xlu0 %3512, %v1291_v3  }
 0x3d6   :  { %v1292_v29 = vpop.trf.xlu1 }
 0x3d7   :  { %1350 = vperm.xlu0 %3512, %v1292_v29  }
 0x3da   :  { %v1293_v8 = vpop.trf.xlu1 }
 0x3db   :  { %1355 = vperm.xlu0 %3512, %v1293_v8   ;;  %v2892_v8 = vld [vmem:[%s5543_s1 + $0x3] sm:$0x1] }
 0x3de   :  { %v1294_v30 = vpop.trf.xlu1 }
 0x3df   :  { %1360 = vperm.xlu0 %3512, %v1294_v30  }
 0x3e2   :  { %v1295_v55 = vpop.trf.xlu1 }
 0x3e3   :  { %1365 = vperm.xlu0 %3512, %v1295_v55  }
 0x3e6   :  { %v1296_v61 = vpop.trf.xlu1 }
 0x3e7   :  { %1370 = vperm.xlu0 %3512, %v1296_v61  }
 0x3ea   :  { %v1297_v14 = vpop.trf.xlu1 }
 0x3eb   :  { %1375 = vperm.xlu0 %3512, %v1297_v14  }
 0x3ee   :  { %v1298_v51 = vpop.trf.xlu1 }
 0x3ef   :  { %1380 = vperm.xlu0 %3512, %v1298_v51  }
 0x3f2   :  { %v1299_v11 = vpop.trf.xlu1 }
 0x3f3   :  { %1385 = vperm.xlu0 %3512, %v1299_v11  }
 0x3f6   :  { %v1300_v18 = vpop.trf.xlu1 }
 0x3f7   :  { %1390 = vperm.xlu0 %3512, %v1300_v18   ;;  %v1302_v18 = vmul.f32 %v4307_v49, %v3922_v12  ;;  %v1307_v49 = vmul.f32 %v4364_v58, %v3922_v12 }
 0x3fa   :  { %v1301_v0 = vpop.trf.xlu1 }
 0x3fb   :  { %1395 = vperm.xlu0 %3512, %v1301_v0   ;;  %v1303_v0 = vmul.f32 %v4319_v44, %v3922_v12  ;;  %v1308_v44 = vmul.f32 %v4388_v41, %v3922_v12 }
 0x442   :  { %v1326_v3 = vpop.permute.xlu0 %1325 }
 0x446   :  { %v1331_v29 = vpop.permute.xlu0 %1330 }
 0x44a   :  { %v1336_v26 = vpop.permute.xlu0 %1335 }
 0x44e   :  { %v1341_v30 = vpop.permute.xlu0 %1340  ;;  %v1263_v55 = vpop.f32.mrb[2].mxu1 }
 0x44f   :  { %v1264_v61 = vadd.f32 %v2892_v8, %v1263_v55  ;;  %v3172_v63 = vpop.f32.mrb[3].mxu1  ;;  %v1321_v8 = vpop.permute.xlu1 %1320 }
 0x451   :  { %3520 = vtanh.f32 %v1264_v61 }
 0x452   :  { %v1346_v14 = vpop.permute.xlu0 %1345 }
 0x456   :  { %v1351_v51 = vpop.permute.xlu0 %1350 }
 0x45a   :  { %v1356_v23 = vpop.permute.xlu0 %1355 }
 0x45b   :  { %v4590_v11 = vpop.eup %3520 }
 0x45c   :  { %5632 = vst [vmem:[#allocation13_spill] sm:$0xff] %v4590_v11  ;;  %v4602_v63 = vrot.slane %v4590_v11, %v5623_v27  ;;  %1269 = vst [vmem:[#allocation3 + $0x3] sm:$0x1] %v4590_v11  ;;  %1621 = vxpose.xlu0.b32.start.end [1/1] (short) %v4590_v11, 128 }
 0x45e   :  { %v1407_v55 = vmul.f32 %v4602_v63, %v1346_v14  ;;  %v1408_v61 = vmul.f32 %v4602_v63, %v1351_v51  ;;  %v1409_v27 = vmul.f32 %v4602_v63, %v1356_v23  ;;  %v1361_v11 = vpop.permute.xlu0 %1360  ;;  %v1402_v62 = vmul.f32 %v4602_v63, %v1321_v8 }
 0x45f   :  { %v1410_v58 = vmul.f32 %v4602_v63, %v1361_v11  ;;  %v1403_v17 = vmul.f32 %v4602_v63, %v1326_v3  ;;  %v1404_v41 = vmul.f32 %v4602_v63, %v1331_v29  ;;  %v1405_v42 = vmul.f32 %v4602_v63, %v1336_v26 }
 0x460   :  { %v1423_v32 = vmul.f32 %v1407_v55, %v3937_v38  ;;  %v1424_v1 = vmul.f32 %v1408_v61, %v3937_v38  ;;  %v1425_v14 = vmul.f32 %v1409_v27, %v3937_v38  ;;  %v1418_v51 = vmul.f32 %v1402_v62, %v3937_v38 }
 0x461   :  { %v1426_v23 = vmul.f32 %v1410_v58, %v3937_v38  ;;  %v1419_v8 = vmul.f32 %v1403_v17, %v3937_v38  ;;  %v1420_v11 = vmul.f32 %v1404_v41, %v3937_v38  ;;  %v1421_v3 = vmul.f32 %v1405_v42, %v3937_v38 }
 0x462   :  { %v4630_v53 = vadd.f32 %v1423_v32, %v1307_v49  ;;  %v4632_v29 = vadd.f32 %v1424_v1, %v1308_v44  ;;  %v4634_v26 = vadd.f32 %v1425_v14, %v1309_v24  ;;  %v1366_v55 = vpop.permute.xlu0 %1365  ;;  %v4636_v61 = vadd.f32 %v1418_v51, %v1302_v18 }
 0x463   :  { %v4638_v27 = vadd.f32 %v1426_v23, %v1310_v13  ;;  %v1411_v62 = vmul.f32 %v4602_v63, %v1366_v55  ;;  %v4641_v58 = vadd.f32 %v1419_v8, %v1303_v0  ;;  %v4643_v17 = vadd.f32 %v1420_v11, %v1304_v43 }
 0x464   :  { %v1306_v41 = vmul.f32 %v4304_v31, %v3922_v12  ;;  %v1514_v32 = vmul.f32 %v4636_v61, %v4294_v59  ;;  %v4649_v49 = vadd.f32 %v1421_v3, %v1305_v4  ;;  %v1406_v44 = vmul.f32 %v4602_v63, %v1341_v30 }
 0x465   :  { %v1311_v18 = vmul.f32 %v4447_v16, %v3922_v12  ;;  %v1427_v24 = vmul.f32 %v1411_v62, %v3937_v38  ;;  %v1515_v0 = vmul.f32 %v4641_v58, %v4312_v22  ;;  %v1516_v43 = vmul.f32 %v4643_v17, %v4317_v37 }
 0x466   :  { %v1371_v13 = vpop.permute.xlu0 %1370  ;;  %v1312_v31 = vmul.f32 %v4468_v48, %v3922_v12  ;;  %v1530_v4 = vadd.f32 %v1514_v32, %v4324_v28  ;;  %v1517_v30 = vmul.f32 %v4649_v49, %v4300_v15  ;;  %v1422_v42 = vmul.f32 %v1406_v44, %v3937_v38 }
 0x467   :  { %v4665_v16 = vadd.f32 %v1427_v24, %v1311_v18  ;;  %v1412_v1 = vmul.f32 %v4602_v63, %v1371_v13  ;;  %v1531_v14 = vadd.f32 %v1515_v0, %v4339_v46  ;;  %v1532_v51 = vadd.f32 %v1516_v43, %v4346_v25 }
 0x468   :  { %v1533_v23 = vadd.f32 %v1517_v30, %v4331_v47  ;;  %v4671_v8 = vadd.f32 %v1422_v42, %v1306_v41  ;;  %v1519_v48 = vmul.f32 %v4630_v53, %v4362_v45  ;;  %v1520_v11 = vmul.f32 %v4632_v29, %v4396_v60 }
 0x469   :  { %v1428_v3 = vmul.f32 %v1412_v1, %v3937_v38  ;;  %v3410_v55 = vpack.c.bf16 %v1531_v14, %v1530_v4  ;;  %v1521_v62 = vmul.f32 %v4634_v26, %v4405_v9  ;;  %v1522_v32 = vmul.f32 %v4638_v27, %v4436_v2 }
 0x46a   :  { %v1376_v44 = vpop.permute.xlu0 %1375  ;;  %v3413_v18 = vpack.c.bf16 %v1533_v23, %v1532_v51  ;;  %v1518_v41 = vmul.f32 %v4671_v8, %v4353_v56  ;;  %v1535_v24 = vadd.f32 %v1519_v48, %v4379_v40  ;;  %v1536_v0 = vadd.f32 %v1520_v11, %v4415_v34 }
 0x46b   :  { %v4686_v43 = vadd.f32 %v1428_v3, %v1312_v31  ;;  %v1413_v13 = vmul.f32 %v4602_v63, %v1376_v44  ;;  %3411 = vmatpush3.bf16.msra.mxu0 %v3410_v55  ;;  %v1537_v4 = vadd.f32 %v1521_v62, %v4420_v52  ;;  %v1523_v30 = vmul.f32 %v4665_v16, %v4445_v54 }
 0x46c   :  { %v1313_v42 = vmul.f32 %v4486_v35, %v3922_v12  ;;  %3412 = vmatprep.subr.bf16.mxu0 %v5604_v10  ;;  %v1534_v1 = vadd.f32 %v1518_v41, %v4374_v19  ;;  %v1538_v31 = vadd.f32 %v1522_v32, %v4455_v39  ;;  %v1314_v44 = vmul.f32 %v4507_v50, %v3922_v12 }
 0x46d   :  { %v1429_v14 = vmul.f32 %v1413_v13, %v3937_v38  ;;  %v3419_v51 = vpack.c.bf16 %v1537_v4, %v1536_v0  ;;  %v1539_v23 = vadd.f32 %v1523_v30, %v4460_v20  ;;  %v1524_v35 = vmul.f32 %v4686_v43, %v4476_v21 }
 0x46e   :  { %v1381_v48 = vpop.permute.xlu0 %1380  ;;  %v3416_v11 = vpack.c.bf16 %v1535_v24, %v1534_v1  ;;  %v1315_v50 = vmul.f32 %v4525_v57, %v3922_v12  ;;  %v5633_v57 = vld [vmem:[#allocation8_spill] sm:$0xff] }
 0x46f   :  { %v4699_v3 = vadd.f32 %v1429_v14, %v1313_v42  ;;  %v1414_v55 = vmul.f32 %v4602_v63, %v1381_v48  ;;  %3414 = vmatpush3.bf16.msra.mxu0 %v3413_v18  ;;  %v3422_v62 = vpack.c.bf16 %v1539_v23, %v1538_v31  ;;  %v1540_v18 = vadd.f32 %v1524_v35, %v4495_v7 }
 0x470   :  { %3415 = vmatprep.subr.bf16.mxu0 %v5604_v10  ;;  %v1316_v48 = vmul.f32 %v4546_v36, %v3922_v12 }
 0x471   :  { %v1430_v32 = vmul.f32 %v1414_v55, %v3937_v38  ;;  %v1525_v41 = vmul.f32 %v4699_v3, %v4484_v5 }
 0x472   :  { %v1386_v24 = vpop.permute.xlu0 %1385 }
 0x473   :  { %v4710_v0 = vadd.f32 %v1430_v32, %v1314_v44  ;;  %v1415_v13 = vmul.f32 %v4602_v63, %v1386_v24  ;;  %3417 = vmatpush3.bf16.msra.mxu0 %v3416_v11  ;;  %v1541_v4 = vadd.f32 %v1525_v41, %v4500_v6  ;;  %v5635_v24 = vld [vmem:[#allocation7_spill] sm:$0xff] }
 0x474   :  { %3418 = vmatprep.subr.bf16.mxu0 %v5604_v10 }
 0x475   :  { %v1431_v30 = vmul.f32 %v1415_v13, %v3937_v38  ;;  %v3425_v42 = vpack.c.bf16 %v1541_v4, %v1540_v18  ;;  %v1526_v23 = vmul.f32 %v4710_v0, %v4515_v33  ;;  %v5636_v18 = vld [vmem:[#allocation17_spill] sm:$0xff] }
 0x476   :  { %v1391_v1 = vpop.permute.xlu0 %1390  ;;  %v1317_v36 = vmul.f32 %v5636_v18, %v3922_v12 }
 0x477   :  { %v4719_v14 = vadd.f32 %v1431_v30, %v1315_v50  ;;  %v1416_v31 = vmul.f32 %v4602_v63, %v1391_v1  ;;  %3420 = vmatpush3.bf16.msra.mxu0 %v3419_v51  ;;  %v5634_v51 = vld [vmem:[#allocation6_spill] sm:$0xff]  ;;  %v5637_v1 = vld [vmem:[#allocation9_spill] sm:$0xff] }
 0x478   :  { %3421 = vmatprep.subr.bf16.mxu0 %v5604_v10  ;;  %v1542_v41 = vadd.f32 %v1526_v23, %v5634_v51  ;;  %v5639_v23 = vld [vmem:[#allocation11_spill] sm:$0xff] }
 0x479   :  { %v1432_v11 = vmul.f32 %v1416_v31, %v3937_v38  ;;  %v1527_v55 = vmul.f32 %v4719_v14, %v5633_v57 }
 0x47a   :  { %v1396_v35 = vpop.permute.xlu0 %1395 }
 0x47b   :  { %v4730_v44 = vadd.f32 %v1432_v11, %v1316_v48  ;;  %v1417_v32 = vmul.f32 %v4602_v63, %v1396_v35  ;;  %3423 = vmatpush3.bf16.msra.mxu0 %v3422_v62  ;;  %v1543_v13 = vadd.f32 %v1527_v55, %v5635_v24  ;;  %v5638_v63 = vld [vmem:[#allocation10_spill] sm:$0xff]  ;;  %v5640_v11 = vld [vmem:[#allocation12_spill] sm:$0xff] }
 0x47c   :  { %3424 = vmatprep.subr.bf16.mxu0 %v5604_v10 }
 0x47d   :  { %v1433_v4 = vmul.f32 %v1417_v32, %v3937_v38  ;;  %v3428_v50 = vpack.c.bf16 %v1543_v13, %v1542_v41  ;;  %v1528_v31 = vmul.f32 %v4730_v44, %v5637_v1  ;;  %v5642_v32 = vmov 0.0  }
 0x47f   :  { %v4739_v30 = vadd.f32 %v1433_v4, %v1317_v36  ;;  %3426 = vmatpush3.bf16.msra.mxu0 %v3425_v42  ;;  %v1544_v48 = vadd.f32 %v1528_v31, %v5639_v23  ;;  %v5641_v42 = vld [vmem:[#allocation13_spill] sm:$0xff] }
 0x480   :  { %3427 = vmatprep.subr.bf16.mxu0 %v5604_v10 }
 0x481   :  { %v1529_v62 = vmul.f32 %v4739_v30, %v5638_v63 }
 0x483   :  { %3429 = vmatpush3.bf16.msra.mxu0 %v3428_v50  ;;  %v1545_v55 = vadd.f32 %v1529_v62, %v5640_v11  ;;  %v1657_v11 = vmul.f32 %v4671_v8, %v3922_v12 }
 0x484   :  { %3430 = vmatprep.subr.bf16.mxu0 %v5604_v10 }
 0x485   :  { %v3431_v35 = vpack.c.bf16 %v1545_v55, %v1544_v48 }
 0x487   :  { %3432 = vmatpush3.bf16.msra.mxu0 %v3431_v35 }
 0x488   :  { %3457 = vmatprep.subr.bf16.mxu0 %v5604_v10 }
 0x48a   :  { %3206 = vmatmul.mubr.f32.vlgmr.msra.gmra.mrb[4].mxu0 %v5641_v42 }
 0x48b   :  { %3275 = vmatprep.mubr.msk.f32.mxu0 %vm3555_vm0, %v5642_v32 }
 0x4dc   :  { %v1637_v41 = vpop.trf.xlu0 }
 0x4dd   :  { %1671 = vperm.xlu1 %3513, %v1637_v41  }
 0x4e0   :  { %v1638_v13 = vpop.trf.xlu0 }
 0x4e1   :  { %1676 = vperm.xlu0 %3512, %v1638_v13  }
 0x4e4   :  { %v1639_v18 = vpop.trf.xlu0 }
 0x4e5   :  { %1681 = vperm.xlu1 %3513, %v1639_v18  }
 0x4e8   :  { %v1640_v36 = vpop.trf.xlu0 }
 0x4e9   :  { %1686 = vperm.xlu1 %3513, %v1640_v36  }
 0x4ec   :  { %v1641_v4 = vpop.trf.xlu0 }
 0x4ed   :  { %1691 = vperm.xlu1 %3513, %v1641_v4   ;;  %v2893_v4 = vld [vmem:[%s5543_s1 + $0x4] sm:$0x1] }
 0x4f0   :  { %v1642_v50 = vpop.trf.xlu0 }
 0x4f1   :  { %1696 = vperm.xlu1 %3513, %v1642_v50  }
 0x4f4   :  { %v1643_v31 = vpop.trf.xlu0 }
 0x4f5   :  { %1701 = vperm.xlu1 %3513, %v1643_v31  }
 0x4f8   :  { %v1644_v62 = vpop.trf.xlu0 }
 0x4f9   :  { %1706 = vperm.xlu1 %3513, %v1644_v62  }
 0x4fc   :  { %v1645_v48 = vpop.trf.xlu0 }
 0x4fd   :  { %1711 = vperm.xlu1 %3513, %v1645_v48  }
 0x500   :  { %v1646_v55 = vpop.trf.xlu0 }
 0x501   :  { %1716 = vperm.xlu1 %3513, %v1646_v55  }
 0x504   :  { %v1647_v35 = vpop.trf.xlu0 }
 0x505   :  { %1721 = vperm.xlu1 %3513, %v1647_v35  }
 0x508   :  { %v1648_v42 = vpop.trf.xlu0 }
 0x509   :  { %1726 = vperm.xlu1 %3513, %v1648_v42  }
 0x50c   :  { %v1649_v41 = vpop.trf.xlu0 }
 0x50d   :  { %1731 = vperm.xlu1 %3513, %v1649_v41   ;;  %v5644_v41 = vld [vmem:[#allocation15_spill] sm:$0xff] }
 0x510   :  { %v1650_v13 = vpop.trf.xlu0 }
 0x511   :  { %1736 = vperm.xlu1 %3513, %v1650_v13  }
 0x514   :  { %v1651_v18 = vpop.trf.xlu0 }
 0x515   :  { %1741 = vperm.xlu1 %3513, %v1651_v18  }
 0x518   :  { %v1652_v36 = vpop.trf.xlu0 }
 0x519   :  { %1746 = vperm.xlu1 %3513, %v1652_v36  }
 0x55c   :  { %v1672_v48 = vpop.permute.xlu1 %1671 }
 0x55d   :  { %v1614_v50 = vpop.f32.mrb[4].mxu0 }
 0x55e   :  { %v1615_v31 = vadd.f32 %v2893_v4, %v1614_v50  ;;  %v3207_v62 = vpop.f32.mrb[5].mxu0 }
 0x55f   :  { %v1653_v62 = vmul.f32 %v4636_v61, %v3922_v12  ;;  %v1655_v61 = vmul.f32 %v4643_v17, %v3922_v12 }
 0x560   :  { %3522 = vtanh.f32 %v1615_v31  ;;  %v1677_v18 = vpop.permute.xlu0 %1676 }
 0x564   :  { %v1682_v55 = vpop.permute.xlu1 %1681 }
 0x568   :  { %v1687_v35 = vpop.permute.xlu1 %1686 }
 0x56a   :  { %v4756_v42 = vpop.eup %3522 }
 0x56b   :  { %5643 = vst [vmem:[#allocation14_spill] sm:$0xff] %v4756_v42  ;;  %v4760_v13 = vrot.slane %v4756_v42, %v5644_v41  ;;  %1620 = vst [vmem:[#allocation3 + $0x4] sm:$0x1] %v4756_v42  ;;  %1972 = vxpose.xlu1.b32.start.end [1/1] (short) %v4756_v42, 128  ;;  %v1656_v41 = vmul.f32 %v4649_v49, %v3922_v12 }
 0x56c   :  { %v1692_v36 = vpop.permute.xlu1 %1691 }
 0x56d   :  { %v1756_v32 = vmul.f32 %v4760_v13, %v1687_v35  ;;  %v1757_v4 = vmul.f32 %v4760_v13, %v1692_v36  ;;  %v1753_v50 = vmul.f32 %v4760_v13, %v1672_v48  ;;  %v1754_v31 = vmul.f32 %v4760_v13, %v1677_v18 }
 0x56e   :  { %v1755_v42 = vmul.f32 %v4760_v13, %v1682_v55  ;;  %v1654_v18 = vmul.f32 %v4641_v58, %v3922_v12  ;;  %v1658_v58 = vmul.f32 %v4630_v53, %v3922_v12 }
 0x56f   :  { %v1772_v23 = vmul.f32 %v1756_v32, %v3937_v38  ;;  %v1773_v35 = vmul.f32 %v1757_v4, %v3937_v38  ;;  %v1769_v36 = vmul.f32 %v1753_v50, %v3937_v38  ;;  %v1770_v48 = vmul.f32 %v1754_v31, %v3937_v38 }
 0x570   :  { %v1697_v49 = vpop.permute.xlu1 %1696  ;;  %v1771_v63 = vmul.f32 %v1755_v42, %v3937_v38 }
 0x571   :  { %v4784_v8 = vadd.f32 %v1772_v23, %v1656_v41  ;;  %v4786_v55 = vadd.f32 %v1773_v35, %v1657_v11  ;;  %v1758_v32 = vmul.f32 %v4760_v13, %v1697_v49  ;;  %v4789_v4 = vadd.f32 %v1769_v36, %v1653_v62 }
 0x572   :  { %v4791_v50 = vadd.f32 %v1770_v48, %v1654_v18  ;;  %v4793_v31 = vadd.f32 %v1771_v63, %v1655_v61 }
 0x573   :  { %v1774_v17 = vmul.f32 %v1758_v32, %v3937_v38  ;;  %v1865_v42 = vmul.f32 %v4789_v4, %v4294_v59  ;;  %v1868_v23 = vmul.f32 %v4784_v8, %v4300_v15  ;;  %v1869_v15 = vmul.f32 %v4786_v55, %v4353_v56 }
 0x574   :  { %v1702_v11 = vpop.permute.xlu1 %1701  ;;  %v1866_v41 = vmul.f32 %v4791_v50, %v4312_v22  ;;  %v1867_v62 = vmul.f32 %v4793_v31, %v4317_v37  ;;  %v1659_v22 = vmul.f32 %v4632_v29, %v3922_v12  ;;  %v1660_v56 = vmul.f32 %v4634_v26, %v3922_v12 }
 0x575   :  { %v4806_v63 = vadd.f32 %v1774_v17, %v1658_v58  ;;  %v1759_v35 = vmul.f32 %v4760_v13, %v1702_v11  ;;  %v1881_v53 = vadd.f32 %v1865_v42, %v4324_v28  ;;  %v1884_v36 = vadd.f32 %v1868_v23, %v4331_v47 }
 0x576   :  { %v1882_v59 = vadd.f32 %v1866_v41, %v4339_v46  ;;  %v1883_v48 = vadd.f32 %v1867_v62, %v4346_v25  ;;  %v1885_v46 = vadd.f32 %v1869_v15, %v4374_v19  ;;  %v1661_v19 = vmul.f32 %v4638_v27, %v3922_v12 }
 0x577   :  { %v1775_v37 = vmul.f32 %v1759_v35, %v3937_v38  ;;  %v1870_v18 = vmul.f32 %v4806_v63, %v4362_v45  ;;  %v1662_v27 = vmul.f32 %v4665_v16, %v3922_v12 }
 0x578   :  { %v1707_v61 = vpop.permute.xlu1 %1706  ;;  %v3434_v49 = vpack.c.bf16 %v1882_v59, %v1881_v53  ;;  %v3437_v28 = vpack.c.bf16 %v1884_v36, %v1883_v48 }
 0x579   :  { %v4820_v32 = vadd.f32 %v1775_v37, %v1659_v22  ;;  %v1760_v47 = vmul.f32 %v4760_v13, %v1707_v61  ;;  %v1886_v25 = vadd.f32 %v1870_v18, %v4379_v40 }
 0x57a   :  { %3435 = vmatpush3.bf16.msra.mxu1 %v3434_v49  ;;  %v1664_v49 = vmul.f32 %v4699_v3, %v3922_v12 }
 0x57b   :  { %v1776_v29 = vmul.f32 %v1760_v47, %v3937_v38  ;;  %3436 = vmatprep.subr.bf16.mxu1 %v5604_v10  ;;  %v3440_v45 = vpack.c.bf16 %v1886_v25, %v1885_v46  ;;  %v1871_v23 = vmul.f32 %v4820_v32, %v4396_v60 }
 0x57c   :  { %v1712_v58 = vpop.permute.xlu1 %1711 }
 0x57d   :  { %v4829_v17 = vadd.f32 %v1776_v29, %v1660_v56  ;;  %v1761_v42 = vmul.f32 %v4760_v13, %v1712_v58  ;;  %v1887_v35 = vadd.f32 %v1871_v23, %v4415_v34  ;;  %v1663_v34 = vmul.f32 %v4686_v43, %v3922_v12 }
 0x57e   :  { %3438 = vmatpush3.bf16.msra.mxu1 %v3437_v28 }
 0x57f   :  { %v1777_v40 = vmul.f32 %v1761_v42, %v3937_v38  ;;  %3439 = vmatprep.subr.bf16.mxu1 %v5604_v10  ;;  %v1872_v26 = vmul.f32 %v4829_v17, %v4405_v9 }
 0x580   :  { %v1717_v11 = vpop.permute.xlu1 %1716 }
 0x581   :  { %v4840_v41 = vadd.f32 %v1777_v40, %v1661_v19  ;;  %v1762_v62 = vmul.f32 %v4760_v13, %v1717_v11  ;;  %v1888_v60 = vadd.f32 %v1872_v26, %v4420_v52 }
 0x582   :  { %3441 = vmatpush3.bf16.msra.mxu1 %v3440_v45 }
 0x583   :  { %v1778_v53 = vmul.f32 %v1762_v62, %v3937_v38  ;;  %3442 = vmatprep.subr.bf16.mxu1 %v5604_v10  ;;  %v3443_v36 = vpack.c.bf16 %v1888_v60, %v1887_v35  ;;  %v1873_v15 = vmul.f32 %v4840_v41, %v4436_v2 }
 0x584   :  { %v1722_v59 = vpop.permute.xlu1 %1721 }
 0x585   :  { %v4849_v9 = vadd.f32 %v1778_v53, %v1662_v27  ;;  %v1763_v48 = vmul.f32 %v4760_v13, %v1722_v59  ;;  %v1889_v61 = vadd.f32 %v1873_v15, %v4455_v39  ;;  %v1665_v39 = vmul.f32 %v4710_v0, %v3922_v12  ;;  %v5645_v59 = vld [vmem:[#allocation10_spill] sm:$0xff] }
 0x586   :  { %3444 = vmatpush3.bf16.msra.mxu1 %v3443_v36 }
 0x587   :  { %v1779_v52 = vmul.f32 %v1763_v48, %v3937_v38  ;;  %3445 = vmatprep.subr.bf16.mxu1 %v5604_v10  ;;  %v1874_v16 = vmul.f32 %v4849_v9, %v4445_v54 }
 0x588   :  { %v1727_v22 = vpop.permute.xlu1 %1726 }
 0x589   :  { %v4860_v37 = vadd.f32 %v1779_v52, %v1663_v34  ;;  %v1764_v18 = vmul.f32 %v4760_v13, %v1727_v22  ;;  %v1890_v2 = vadd.f32 %v1874_v16, %v4460_v20  ;;  %v5649_v52 = vmov 0.0  }
 0x58b   :  { %v1780_v43 = vmul.f32 %v1764_v18, %v3937_v38  ;;  %v3446_v28 = vpack.c.bf16 %v1890_v2, %v1889_v61  ;;  %v1875_v25 = vmul.f32 %v4860_v37, %v4476_v21  ;;  %v1666_v21 = vmul.f32 %v4719_v14, %v3922_v12 }
 0x58c   :  { %v1732_v47 = vpop.permute.xlu1 %1731 }
 0x58d   :  { %v4868_v46 = vadd.f32 %v1780_v43, %v1664_v49  ;;  %v1765_v54 = vmul.f32 %v4760_v13, %v1732_v47  ;;  %3447 = vmatpush3.bf16.msra.mxu1 %v3446_v28  ;;  %v1891_v58 = vadd.f32 %v1875_v25, %v4495_v7  ;;  %v1667_v7 = vmul.f32 %v4730_v44, %v3922_v12 }
 0x58e   :  { %3448 = vmatprep.subr.bf16.mxu1 %v5604_v10 }
 0x58f   :  { %v1781_v20 = vmul.f32 %v1765_v54, %v3937_v38  ;;  %v1876_v3 = vmul.f32 %v4868_v46, %v4484_v5 }
 0x590   :  { %v1737_v56 = vpop.permute.xlu1 %1736 }
 0x591   :  { %v4879_v29 = vadd.f32 %v1781_v20, %v1665_v39  ;;  %v1766_v45 = vmul.f32 %v4760_v13, %v1737_v56  ;;  %v1892_v42 = vadd.f32 %v1876_v3, %v4500_v6 }
 0x593   :  { %v1782_v23 = vmul.f32 %v1766_v45, %v3937_v38  ;;  %v3449_v0 = vpack.c.bf16 %v1892_v42, %v1891_v58  ;;  %v1877_v26 = vmul.f32 %v4879_v29, %v4515_v33  ;;  %v1668_v33 = vmul.f32 %v4739_v30, %v3922_v12  ;;  %v5648_v30 = vld [vmem:[#allocation14_spill] sm:$0xff] }
 0x594   :  { %v1742_v19 = vpop.permute.xlu1 %1741 }
 0x595   :  { %v4887_v40 = vadd.f32 %v1782_v23, %v1666_v21  ;;  %v1767_v5 = vmul.f32 %v4760_v13, %v1742_v19  ;;  %3450 = vmatpush3.bf16.msra.mxu1 %v3449_v0  ;;  %v1893_v60 = vadd.f32 %v1877_v26, %v5634_v51  ;;  %v5646_v51 = vld [vmem:[#allocation11_spill] sm:$0xff]  ;;  %v2894_v21 = vld [vmem:[%s5543_s1 + $0x5] sm:$0x1] }
 0x596   :  { %3451 = vmatprep.subr.bf16.mxu1 %v5604_v10 }
 0x597   :  { %v1783_v6 = vmul.f32 %v1767_v5, %v3937_v38  ;;  %v1878_v14 = vmul.f32 %v4887_v40, %v5633_v57 }
 0x598   :  { %v1747_v11 = vpop.permute.xlu1 %1746 }
 0x599   :  { %v4898_v62 = vadd.f32 %v1783_v6, %v1667_v7  ;;  %v1768_v35 = vmul.f32 %v4760_v13, %v1747_v11  ;;  %v1894_v27 = vadd.f32 %v1878_v14, %v5635_v24  ;;  %v5647_v24 = vld [vmem:[#allocation12_spill] sm:$0xff]  ;;  %v2004_v11 = vmul.f32 %v4789_v4, %v3922_v12 }
 0x59a   :  { %v2009_v4 = vmul.f32 %v4806_v63, %v3922_v12 }
 0x59b   :  { %v1784_v53 = vmul.f32 %v1768_v35, %v3937_v38  ;;  %v3452_v44 = vpack.c.bf16 %v1894_v27, %v1893_v60  ;;  %v1879_v57 = vmul.f32 %v4898_v62, %v5637_v1  ;;  %v2005_v35 = vmul.f32 %v4791_v50, %v3922_v12 }
 0x59c   :  { %v2006_v60 = vmul.f32 %v4793_v31, %v3922_v12  ;;  %v2007_v27 = vmul.f32 %v4784_v8, %v3922_v12  ;;  %v2010_v50 = vmul.f32 %v4820_v32, %v3922_v12  ;;  %v2011_v31 = vmul.f32 %v4829_v17, %v3922_v12 }
 0x59d   :  { %v4906_v36 = vadd.f32 %v1784_v53, %v1668_v33  ;;  %3453 = vmatpush3.bf16.msra.mxu1 %v3452_v44  ;;  %v1895_v48 = vadd.f32 %v1879_v57, %v5646_v51  ;;  %v5650_v33 = vld [vmem:[#allocation15_spill] sm:$0xff]  ;;  %v2012_v8 = vmul.f32 %v4840_v41, %v3922_v12 }
 0x59e   :  { %3454 = vmatprep.subr.bf16.mxu1 %v5604_v10 }
 0x59f   :  { %v1880_v13 = vmul.f32 %v4906_v36, %v5645_v59 }
 0x5a1   :  { %v1896_v15 = vadd.f32 %v1880_v13, %v5647_v24 }
 0x5a3   :  { %v3455_v34 = vpack.c.bf16 %v1896_v15, %v1895_v48 }
 0x5a5   :  { %3456 = vmatpush3.bf16.msra.mxu1 %v3455_v34 }
 0x5a6   :  { %3481 = vmatprep.subr.bf16.mxu1 %v5604_v10 }
 0x5a8   :  { %3241 = vmatmul.mubr.f32.vlgmr.msra.gmra.mrb[4].mxu1 %v5648_v30 }
 0x5a9   :  { %3310 = vmatprep.mubr.msk.f32.mxu1 %vm3555_vm0, %v5649_v52 }
 0x5eb   :  { %v1988_v16 = vpop.trf.xlu1 }
 0x5ec   :  { %2022 = vperm.xlu1 %3513, %v1988_v16  }
 0x5ef   :  { %v1989_v1 = vpop.trf.xlu1 }
 0x5f0   :  { %2027 = vperm.xlu0 %3512, %v1989_v1   ;;  %v4963_v1 = vld [vmem:[%s5546_s4] sm:$0xff] }
 0x5f3   :  { %v1990_v22 = vpop.trf.xlu1 }
 0x5f4   :  { %2032 = vperm.xlu0 %3512, %v1990_v22  }
 0x5f7   :  { %v1991_v18 = vpop.trf.xlu1 }
 0x5f8   :  { %2037 = vperm.xlu0 %3512, %v1991_v18  }
 0x5fb   :  { %v1992_v61 = vpop.trf.xlu1 }
 0x5fc   :  { %2042 = vperm.xlu0 %3512, %v1992_v61  }
 0x5ff   :  { %v1993_v2 = vpop.trf.xlu1 }
 0x600   :  { %2047 = vperm.xlu0 %3512, %v1993_v2  }
 0x603   :  { %v1994_v49 = vpop.trf.xlu1 }
 0x604   :  { %2052 = vperm.xlu0 %3512, %v1994_v49  }
 0x607   :  { %v1995_v43 = vpop.trf.xlu1 }
 0x608   :  { %2057 = vperm.xlu0 %3512, %v1995_v43  }
 0x60b   :  { %v1996_v28 = vpop.trf.xlu1 }
 0x60c   :  { %2062 = vperm.xlu0 %3512, %v1996_v28  }
 0x60f   :  { %v1997_v47 = vpop.trf.xlu1 }
 0x610   :  { %2067 = vperm.xlu0 %3512, %v1997_v47   ;;  %v4978_v47 = vld [vmem:[%s5546_s4 + $0x8] sm:$0xff] }
 0x613   :  { %v1998_v54 = vpop.trf.xlu1 }
 0x614   :  { %2072 = vperm.xlu0 %3512, %v1998_v54   ;;  %v4983_v54 = vld [vmem:[%s5546_s4 + $0x10] sm:$0xff] }
 0x617   :  { %v1999_v25 = vpop.trf.xlu1 }
 0x618   :  { %2077 = vperm.xlu0 %3512, %v1999_v25  }
 0x61b   :  { %v2000_v39 = vpop.trf.xlu1 }
 0x61c   :  { %2082 = vperm.xlu0 %3512, %v2000_v39  }
 0x61f   :  { %v2001_v20 = vpop.trf.xlu1 }
 0x620   :  { %2087 = vperm.xlu0 %3512, %v2001_v20  }
 0x623   :  { %v2002_v3 = vpop.trf.xlu1 }
 0x624   :  { %2092 = vperm.xlu0 %3512, %v2002_v3   ;;  %v4993_v3 = vld [vmem:[%s5545_s3] sm:$0xff] }
 0x627   :  { %v2003_v56 = vpop.trf.xlu1 }
 0x628   :  { %2097 = vperm.xlu0 %3512, %v2003_v56  }
 0x66b   :  { %v2023_v44 = vpop.permute.xlu1 %2022 }
 0x66f   :  { %v2028_v45 = vpop.permute.xlu0 %2027 }
 0x673   :  { %v2033_v58 = vpop.permute.xlu0 %2032 }
 0x677   :  { %v2038_v42 = vpop.permute.xlu0 %2037 }
 0x67b   :  { %v2043_v23 = vpop.permute.xlu0 %2042  ;;  %v1965_v0 = vpop.f32.mrb[4].mxu1 }
 0x67c   :  { %v1966_v19 = vadd.f32 %v2894_v21, %v1965_v0  ;;  %v3242_v5 = vpop.f32.mrb[5].mxu1 }
 0x67e   :  { %3524 = vtanh.f32 %v1966_v19  ;;  %v5016_v19 = vld [vmem:[%s5545_s3 + $0x10] sm:$0xff] }
 0x67f   :  { %v2048_v26 = vpop.permute.xlu0 %2047 }
 0x683   :  { %v2053_v7 = vpop.permute.xlu0 %2052 }
 0x687   :  { %v2058_v6 = vpop.permute.xlu0 %2057 }
 0x688   :  { %v4922_v14 = vpop.eup %3524 }
 0x689   :  { %v4934_v53 = vrot.slane %v4922_v14, %v5650_v33  ;;  %1971 = vst [vmem:[#allocation3 + $0x5] sm:$0x1] %v4922_v14  ;;  %2323 = vxpose.xlu0.b32.start.end [1/1] (short) %v4922_v14, 128 }
 0x68b   :  { %v2109_v57 = vmul.f32 %v4934_v53, %v2048_v26  ;;  %v2110_v59 = vmul.f32 %v4934_v53, %v2053_v7  ;;  %v2111_v13 = vmul.f32 %v4934_v53, %v2058_v6  ;;  %v2063_v51 = vpop.permute.xlu0 %2062  ;;  %v2104_v48 = vmul.f32 %v4934_v53, %v2023_v44  ;;  %v5027_v6 = vld [vmem:[%s5545_s3 + $0x18] sm:$0xff] }
 0x68c   :  { %v2112_v63 = vmul.f32 %v4934_v53, %v2063_v51  ;;  %v2105_v24 = vmul.f32 %v4934_v53, %v2028_v45  ;;  %v2106_v32 = vmul.f32 %v4934_v53, %v2033_v58  ;;  %v2107_v17 = vmul.f32 %v4934_v53, %v2038_v42  ;;  %v5000_v45 = vld [vmem:[%s5546_s4 + $0x18] sm:$0xff]  ;;  %v5007_v42 = vld [vmem:[%s5545_s3 + $0x8] sm:$0xff]  ;;  %v5070_v51 = vld [vmem:[%s5546_s4 + $0x20] sm:$0xff] }
 0x68d   :  { %v2125_v15 = vmul.f32 %v2109_v57, %v3937_v38  ;;  %v2126_v41 = vmul.f32 %v2110_v59, %v3937_v38  ;;  %v2127_v34 = vmul.f32 %v2111_v13, %v3937_v38  ;;  %v2120_v30 = vmul.f32 %v2104_v48, %v3937_v38  ;;  %v5065_v13 = vld [vmem:[%s5545_s3 + $0x28] sm:$0xff]  ;;  %v5075_v48 = vld [vmem:[%s5545_s3 + $0x30] sm:$0xff] }
 0x68e   :  { %v2128_v52 = vmul.f32 %v2112_v63, %v3937_v38  ;;  %v2121_v16 = vmul.f32 %v2105_v24, %v3937_v38  ;;  %v2122_v22 = vmul.f32 %v2106_v32, %v3937_v38  ;;  %v2123_v18 = vmul.f32 %v2107_v17, %v3937_v38  ;;  %v5085_v17 = vld [vmem:[%s5545_s3 + $0x38] sm:$0xff] }
 0x68f   :  { %v4967_v61 = vadd.f32 %v2125_v15, %v2009_v4  ;;  %v4969_v2 = vadd.f32 %v2126_v41, %v2010_v50  ;;  %v4971_v49 = vadd.f32 %v2127_v34, %v2011_v31  ;;  %v2068_v43 = vpop.permute.xlu0 %2067  ;;  %v4973_v28 = vadd.f32 %v2120_v30, %v2004_v11  ;;  %v5050_v50 = vld [vmem:[%s5546_s4 + $0x38] sm:$0xff]  ;;  %v5055_v31 = vld [vmem:[%s5546_s4 + $0x40] sm:$0xff]  ;;  %v5092_v41 = vld [vmem:[%s5546_s4 + $0x48] sm:$0xff] }
 0x690   :  { %v4985_v25 = vadd.f32 %v2128_v52, %v2012_v8  ;;  %v2113_v39 = vmul.f32 %v4934_v53, %v2068_v43  ;;  %v4988_v20 = vadd.f32 %v2121_v16, %v2005_v35  ;;  %v4995_v56 = vadd.f32 %v2122_v22, %v2006_v60  ;;  %v5098_v52 = vld [vmem:[%s5545_s3 + $0x20] sm:$0xff] }
 0x691   :  { %v2008_v58 = vmul.f32 %v4786_v55, %v3922_v12  ;;  %v2216_v21 = vmul.f32 %v4963_v1, %v4973_v28  ;;  %v5011_v0 = vadd.f32 %v2123_v18, %v2007_v27  ;;  %v2108_v5 = vmul.f32 %v4934_v53, %v2043_v23  ;;  %v5034_v23 = vld [vmem:[%s5546_s4 + $0x28] sm:$0xff] }
 0x692   :  { %v2013_v55 = vmul.f32 %v4849_v9, %v3922_v12  ;;  %v2129_v26 = vmul.f32 %v2113_v39, %v3937_v38  ;;  %v2217_v7 = vmul.f32 %v4978_v47, %v4988_v20  ;;  %v2218_v11 = vmul.f32 %v4983_v54, %v4995_v56  ;;  %v5039_v9 = vld [vmem:[%s5546_s4 + $0x30] sm:$0xff] }
 0x693   :  { %v2073_v35 = vpop.permute.xlu0 %2072  ;;  %v2014_v60 = vmul.f32 %v4860_v37, %v3922_v12  ;;  %v2232_v27 = vadd.f32 %v2216_v21, %v4993_v3  ;;  %v2219_v44 = vmul.f32 %v5000_v45, %v5011_v0  ;;  %v2124_v4 = vmul.f32 %v2108_v5, %v3937_v38  ;;  %v5111_v5 = vld [vmem:[%s5545_s3 + $0x40] sm:$0xff] }
 0x694   :  { %v5057_v8 = vadd.f32 %v2129_v26, %v2013_v55  ;;  %v2114_v37 = vmul.f32 %v4934_v53, %v2073_v35  ;;  %v2233_v57 = vadd.f32 %v2217_v7, %v5007_v42  ;;  %v2234_v59 = vadd.f32 %v2218_v11, %v5016_v19  ;;  %v5116_v55 = vld [vmem:[%s5545_s3 + $0x48] sm:$0xff] }
 0x695   :  { %v2235_v63 = vadd.f32 %v2219_v44, %v5027_v6  ;;  %v5078_v24 = vadd.f32 %v2124_v4, %v2008_v58  ;;  %v2221_v32 = vmul.f32 %v5034_v23, %v4967_v61  ;;  %v2222_v15 = vmul.f32 %v5039_v9, %v4969_v2 }
 0x696   :  { %v2130_v34 = vmul.f32 %v2114_v37, %v3937_v38  ;;  %v3458_v30 = vpack.c.bf16 %v2233_v57, %v2232_v27  ;;  %v2223_v16 = vmul.f32 %v5050_v50, %v4971_v49  ;;  %v2224_v22 = vmul.f32 %v5055_v31, %v4985_v25 }
 0x697   :  { %v2078_v18 = vpop.permute.xlu0 %2077  ;;  %v3461_v43 = vpack.c.bf16 %v2235_v63, %v2234_v59  ;;  %v2220_v39 = vmul.f32 %v5070_v51, %v5078_v24  ;;  %v2237_v58 = vadd.f32 %v2221_v32, %v5065_v13  ;;  %v2238_v21 = vadd.f32 %v2222_v15, %v5075_v48 }
 0x698   :  { %v5118_v26 = vadd.f32 %v2130_v34, %v2014_v60  ;;  %v2115_v7 = vmul.f32 %v4934_v53, %v2078_v18  ;;  %3459 = vmatpush3.bf16.msra.mxu0 %v3458_v30  ;;  %v2239_v11 = vadd.f32 %v2223_v16, %v5085_v17  ;;  %v2225_v35 = vmul.f32 %v5092_v41, %v5057_v8  ;;  %v5131_v60 = vld [vmem:[%s5546_s4 + $0x50] sm:$0xff]  ;;  %v5155_v18 = vld [vmem:[%s5545_s3 + $0x58] sm:$0xff] }
 0x699   :  { %v2015_v27 = vmul.f32 %v4868_v46, %v3922_v12  ;;  %3460 = vmatprep.subr.bf16.mxu0 %v5604_v10  ;;  %v2236_v44 = vadd.f32 %v2220_v39, %v5098_v52  ;;  %v2240_v57 = vadd.f32 %v2224_v22, %v5111_v5  ;;  %v5139_v46 = vld [vmem:[%s5546_s4 + $0x58] sm:$0xff]  ;;  %v5150_v22 = vld [vmem:[%s5545_s3 + $0x50] sm:$0xff]  ;;  %v2016_v39 = vmul.f32 %v4879_v29, %v3922_v12  ;;  %v5171_v29 = vld [vmem:[%s5546_s4 + $0x60] sm:$0xff] }
 0x69a   :  { %v2131_v4 = vmul.f32 %v2115_v7, %v3937_v38  ;;  %v3467_v37 = vpack.c.bf16 %v2239_v11, %v2238_v21  ;;  %v2241_v59 = vadd.f32 %v2225_v35, %v5116_v55  ;;  %v2226_v16 = vmul.f32 %v5131_v60, %v5118_v26 }
 0x69b   :  { %v2083_v63 = vpop.permute.xlu0 %2082  ;;  %v3464_v32 = vpack.c.bf16 %v2237_v58, %v2236_v44  ;;  %v2017_v44 = vmul.f32 %v4887_v40, %v3922_v12  ;;  %v5190_v40 = vld [vmem:[%s5545_s3 + $0x60] sm:$0xff] }
 0x69c   :  { %v5141_v15 = vadd.f32 %v2131_v4, %v2015_v27  ;;  %v2116_v34 = vmul.f32 %v4934_v53, %v2083_v63  ;;  %3462 = vmatpush3.bf16.msra.mxu0 %v3461_v43  ;;  %v3470_v30 = vpack.c.bf16 %v2241_v59, %v2240_v57  ;;  %v2242_v35 = vadd.f32 %v2226_v16, %v5150_v22  ;;  %v5179_v63 = vld [vmem:[%s5546_s4 + $0x68] sm:$0xff] }
 0x69d   :  { %3463 = vmatprep.subr.bf16.mxu0 %v5604_v10 }
 0x69e   :  { %v2132_v43 = vmul.f32 %v2116_v34, %v3937_v38  ;;  %v2227_v58 = vmul.f32 %v5139_v46, %v5141_v15 }
 0x69f   :  { %v2088_v21 = vpop.permute.xlu0 %2087 }
 0x6a0   :  { %v5162_v7 = vadd.f32 %v2132_v43, %v2016_v39  ;;  %v2117_v11 = vmul.f32 %v4934_v53, %v2088_v21  ;;  %3465 = vmatpush3.bf16.msra.mxu0 %v3464_v32  ;;  %v2243_v27 = vadd.f32 %v2227_v58, %v5155_v18  ;;  %v5195_v39 = vld [vmem:[%s5545_s3 + $0x68] sm:$0xff]  ;;  %v2018_v43 = vmul.f32 %v4898_v62, %v3922_v12  ;;  %v5211_v62 = vld [vmem:[%s5546_s4 + $0x70] sm:$0xff] }
 0x6a1   :  { %3466 = vmatprep.subr.bf16.mxu0 %v5604_v10 }
 0x6a2   :  { %v2133_v4 = vmul.f32 %v2117_v11, %v3937_v38  ;;  %v3473_v57 = vpack.c.bf16 %v2243_v27, %v2242_v35  ;;  %v2228_v16 = vmul.f32 %v5171_v29, %v5162_v7 }
 0x6a3   :  { %v2093_v59 = vpop.permute.xlu0 %2092 }
 0x6a4   :  { %v5181_v32 = vadd.f32 %v2133_v4, %v2017_v44  ;;  %v2118_v34 = vmul.f32 %v4934_v53, %v2093_v59  ;;  %3468 = vmatpush3.bf16.msra.mxu0 %v3467_v37  ;;  %v2244_v27 = vadd.f32 %v2228_v16, %v5190_v40  ;;  %v2019_v4 = vmul.f32 %v4906_v36, %v3922_v12  ;;  %v5229_v36 = vld [vmem:[%s5545_s3 + $0x70] sm:$0xff] }
 0x6a5   :  { %3469 = vmatprep.subr.bf16.mxu0 %v5604_v10  ;;  %5652 = vst [vmem:[#allocation8_spill] sm:$0xff] %v5229_v36 }
 0x6a6   :  { %v2134_v37 = vmul.f32 %v2118_v34, %v3937_v38  ;;  %v2229_v58 = vmul.f32 %v5179_v63, %v5181_v32 }
 0x6a7   :  { %v2098_v21 = vpop.permute.xlu0 %2097 }
 0x6a8   :  { %v5202_v11 = vadd.f32 %v2134_v37, %v2018_v43  ;;  %v2119_v35 = vmul.f32 %v4934_v53, %v2098_v21  ;;  %3471 = vmatpush3.bf16.msra.mxu0 %v3470_v30  ;;  %v2245_v44 = vadd.f32 %v2229_v58, %v5195_v39  ;;  %v5219_v53 = vld [vmem:[%s5546_s4 + $0x78] sm:$0xff] }
 0x6a9   :  { %3472 = vmatprep.subr.bf16.mxu0 %v5604_v10  ;;  %5651 = vst [vmem:[#allocation16_spill] sm:$0xff] %v5219_v53  ;;  %v5234_v43 = vld [vmem:[%s5545_s3 + $0x78] sm:$0xff] }
 0x6aa   :  { %v2135_v59 = vmul.f32 %v2119_v35, %v3937_v38  ;;  %v3476_v34 = vpack.c.bf16 %v2245_v44, %v2244_v27  ;;  %v2230_v16 = vmul.f32 %v5211_v62, %v5202_v11  ;;  %5653 = vst [vmem:[#allocation6_spill] sm:$0xff] %v5234_v43 }
 0x6ac   :  { %v5221_v30 = vadd.f32 %v2135_v59, %v2019_v4  ;;  %3474 = vmatpush3.bf16.msra.mxu0 %v3473_v57  ;;  %v2246_v57 = vadd.f32 %v2230_v16, %v5229_v36 }
 0x6ad   :  { %3475 = vmatprep.subr.bf16.mxu0 %v5604_v10 }
 0x6ae   :  { %v2231_v37 = vmul.f32 %v5219_v53, %v5221_v30 }
 0x6b0   :  { %3477 = vmatpush3.bf16.msra.mxu0 %v3476_v34  ;;  %v2247_v58 = vadd.f32 %v2231_v37, %v5234_v43  ;;  %v2359_v43 = vmul.f32 %v5078_v24, %v3922_v12 }
 0x6b1   :  { %3478 = vmatprep.subr.bf16.mxu0 %v5604_v10 }
 0x6b2   :  { %v3479_v21 = vpack.c.bf16 %v2247_v58, %v2246_v57 }
 0x6b4   :  { %3480 = vmatpush3.bf16.msra.mxu0 %v3479_v21 }
 0x6b7   :  { %3276 = vmatmul.mubr.f32.vlgmr.msra.gmra.mrb[6].mxu0 %v4922_v14 }
 0x709   :  { %v2339_v35 = vpop.trf.xlu0 }
 0x70a   :  { %2373 = vperm.xlu1 %3513, %v2339_v35  }
 0x70d   :  { %v2340_v27 = vpop.trf.xlu0 }
 0x70e   :  { %2378 = vperm.xlu0 %3512, %v2340_v27  }
 0x711   :  { %v2341_v44 = vpop.trf.xlu0 }
 0x712   :  { %2383 = vperm.xlu1 %3513, %v2341_v44  }
 0x715   :  { %v2342_v4 = vpop.trf.xlu0 }
 0x716   :  { %2388 = vperm.xlu1 %3513, %v2342_v4  }
 0x719   :  { %v2343_v59 = vpop.trf.xlu0 }
 0x71a   :  { %2393 = vperm.xlu1 %3513, %v2343_v59   ;;  %v2895_v59 = vld [vmem:[%s5543_s1 + $0x6] sm:$0x1] }
 0x71d   :  { %v2344_v34 = vpop.trf.xlu0 }
 0x71e   :  { %2398 = vperm.xlu1 %3513, %v2344_v34  }
 0x721   :  { %v2345_v16 = vpop.trf.xlu0 }
 0x722   :  { %2403 = vperm.xlu1 %3513, %v2345_v16  }
 0x725   :  { %v2346_v37 = vpop.trf.xlu0 }
 0x726   :  { %2408 = vperm.xlu1 %3513, %v2346_v37  }
 0x729   :  { %v2347_v57 = vpop.trf.xlu0 }
 0x72a   :  { %2413 = vperm.xlu1 %3513, %v2347_v57  }
 0x72d   :  { %v2348_v58 = vpop.trf.xlu0 }
 0x72e   :  { %2418 = vperm.xlu1 %3513, %v2348_v58  }
 0x731   :  { %v2349_v14 = vpop.trf.xlu0 }
 0x732   :  { %2423 = vperm.xlu1 %3513, %v2349_v14  }
 0x735   :  { %v2350_v21 = vpop.trf.xlu0 }
 0x736   :  { %2428 = vperm.xlu1 %3513, %v2350_v21  }
 0x739   :  { %v2351_v35 = vpop.trf.xlu0 }
 0x73a   :  { %2433 = vperm.xlu1 %3513, %v2351_v35  }
 0x73d   :  { %v2352_v27 = vpop.trf.xlu0 }
 0x73e   :  { %2438 = vperm.xlu1 %3513, %v2352_v27  }
 0x741   :  { %v2353_v44 = vpop.trf.xlu0 }
 0x742   :  { %2443 = vperm.xlu1 %3513, %v2353_v44  }
 0x745   :  { %v2354_v4 = vpop.trf.xlu0 }
 0x746   :  { %2448 = vperm.xlu1 %3513, %v2354_v4  }
 0x789   :  { %v2374_v57 = vpop.permute.xlu1 %2373 }
 0x78a   :  { %v2316_v34 = vpop.f32.mrb[6].mxu0 }
 0x78b   :  { %v2317_v16 = vadd.f32 %v2895_v59, %v2316_v34  ;;  %v3277_v37 = vpop.f32.mrb[7].mxu0 }
 0x78c   :  { %v2355_v37 = vmul.f32 %v4973_v28, %v3922_v12  ;;  %v2357_v28 = vmul.f32 %v4995_v56, %v3922_v12 }
 0x78d   :  { %3526 = vtanh.f32 %v2317_v16  ;;  %v2379_v27 = vpop.permute.xlu0 %2378 }
 0x791   :  { %v2384_v58 = vpop.permute.xlu1 %2383 }
 0x795   :  { %v2389_v14 = vpop.permute.xlu1 %2388 }
 0x797   :  { %v5245_v21 = vpop.eup %3526 }
 0x798   :  { %5654 = vst [vmem:[#allocation7_spill] sm:$0xff] %v5245_v21  ;;  %v5249_v35 = vrot.slane %v5245_v21, %v5650_v33  ;;  %2322 = vst [vmem:[#allocation3 + $0x6] sm:$0x1] %v5245_v21  ;;  %2674 = vxpose.xlu1.b32.start.end [1/1] (short) %v5245_v21, 128  ;;  %v2358_v33 = vmul.f32 %v5011_v0, %v3922_v12 }
 0x799   :  { %v2394_v44 = vpop.permute.xlu1 %2393 }
 0x79a   :  { %v2458_v4 = vmul.f32 %v5249_v35, %v2389_v14  ;;  %v2459_v59 = vmul.f32 %v5249_v35, %v2394_v44  ;;  %v2455_v34 = vmul.f32 %v5249_v35, %v2374_v57  ;;  %v2456_v16 = vmul.f32 %v5249_v35, %v2379_v27 }
 0x79b   :  { %v2457_v21 = vmul.f32 %v5249_v35, %v2384_v58  ;;  %v2356_v27 = vmul.f32 %v4988_v20, %v3922_v12  ;;  %v2360_v20 = vmul.f32 %v4967_v61, %v3922_v12 }
 0x79c   :  { %v2474_v36 = vmul.f32 %v2458_v4, %v3937_v38  ;;  %v2475_v14 = vmul.f32 %v2459_v59, %v3937_v38  ;;  %v2471_v44 = vmul.f32 %v2455_v34, %v3937_v38  ;;  %v2472_v57 = vmul.f32 %v2456_v16, %v3937_v38 }
 0x79d   :  { %v2399_v0 = vpop.permute.xlu1 %2398  ;;  %v2473_v53 = vmul.f32 %v2457_v21, %v3937_v38 }
 0x79e   :  { %v5273_v24 = vadd.f32 %v2474_v36, %v2358_v33  ;;  %v5275_v58 = vadd.f32 %v2475_v14, %v2359_v43  ;;  %v2460_v4 = vmul.f32 %v5249_v35, %v2399_v0  ;;  %v5278_v59 = vadd.f32 %v2471_v44, %v2355_v37 }
 0x79f   :  { %v5280_v34 = vadd.f32 %v2472_v57, %v2356_v27  ;;  %v5282_v16 = vadd.f32 %v2473_v53, %v2357_v28 }
 0x7a0   :  { %v2476_v56 = vmul.f32 %v2460_v4, %v3937_v38  ;;  %v2567_v21 = vmul.f32 %v5278_v59, %v4963_v1  ;;  %v2570_v33 = vmul.f32 %v5273_v24, %v5000_v45  ;;  %v2571_v45 = vmul.f32 %v5275_v58, %v5070_v51 }
 0x7a1   :  { %v2404_v36 = vpop.permute.xlu1 %2403  ;;  %v2568_v43 = vmul.f32 %v5280_v34, %v4978_v47  ;;  %v2569_v37 = vmul.f32 %v5282_v16, %v4983_v54  ;;  %v2361_v47 = vmul.f32 %v4969_v2, %v3922_v12  ;;  %v2362_v2 = vmul.f32 %v4971_v49, %v3922_v12 }
 0x7a2   :  { %v5295_v53 = vadd.f32 %v2476_v56, %v2360_v20  ;;  %v2461_v14 = vmul.f32 %v5249_v35, %v2404_v36  ;;  %v2583_v61 = vadd.f32 %v2567_v21, %v4993_v3  ;;  %v2586_v44 = vadd.f32 %v2570_v33, %v5027_v6 }
 0x7a3   :  { %v2584_v1 = vadd.f32 %v2568_v43, %v5007_v42  ;;  %v2585_v57 = vadd.f32 %v2569_v37, %v5016_v19  ;;  %v2587_v19 = vadd.f32 %v2571_v45, %v5098_v52 }
 0x7a4   :  { %v2477_v54 = vmul.f32 %v2461_v14, %v3937_v38  ;;  %v2572_v27 = vmul.f32 %v5295_v53, %v5034_v23 }
 0x7a5   :  { %v2409_v28 = vpop.permute.xlu1 %2408  ;;  %v3482_v0 = vpack.c.bf16 %v2584_v1, %v2583_v61  ;;  %v3485_v3 = vpack.c.bf16 %v2586_v44, %v2585_v57 }
 0x7a6   :  { %v5309_v4 = vadd.f32 %v2477_v54, %v2361_v47  ;;  %v2462_v42 = vmul.f32 %v5249_v35, %v2409_v28  ;;  %v2588_v6 = vadd.f32 %v2572_v27, %v5065_v13  ;;  %v2363_v13 = vmul.f32 %v4985_v25, %v3922_v12 }
 0x7a7   :  { %3483 = vmatpush3.bf16.msra.mxu1 %v3482_v0  ;;  %v2364_v25 = vmul.f32 %v5057_v8, %v3922_v12  ;;  %v2366_v0 = vmul.f32 %v5141_v15, %v3922_v12 }
 0x7a8   :  { %v2478_v51 = vmul.f32 %v2462_v42, %v3937_v38  ;;  %3484 = vmatprep.subr.bf16.mxu1 %v5604_v10  ;;  %v3488_v23 = vpack.c.bf16 %v2588_v6, %v2587_v19  ;;  %v2573_v33 = vmul.f32 %v5309_v4, %v5039_v9 }
 0x7a9   :  { %v2414_v20 = vpop.permute.xlu1 %2413 }
 0x7aa   :  { %v5318_v56 = vadd.f32 %v2478_v51, %v2362_v2  ;;  %v2463_v21 = vmul.f32 %v5249_v35, %v2414_v20  ;;  %v2589_v14 = vadd.f32 %v2573_v33, %v5075_v48  ;;  %v2365_v48 = vmul.f32 %v5118_v26, %v3922_v12 }
 0x7ab   :  { %3486 = vmatpush3.bf16.msra.mxu1 %v3485_v3 }
 0x7ac   :  { %v2479_v52 = vmul.f32 %v2463_v21, %v3937_v38  ;;  %3487 = vmatprep.subr.bf16.mxu1 %v5604_v10  ;;  %v2574_v49 = vmul.f32 %v5318_v56, %v5050_v50 }
 0x7ad   :  { %v2419_v36 = vpop.permute.xlu1 %2418 }
 0x7ae   :  { %v5329_v43 = vadd.f32 %v2479_v52, %v2363_v13  ;;  %v2464_v37 = vmul.f32 %v5249_v35, %v2419_v36  ;;  %v2590_v9 = vadd.f32 %v2574_v49, %v5085_v17 }
 0x7af   :  { %3489 = vmatpush3.bf16.msra.mxu1 %v3488_v23 }
 0x7b0   :  { %v2480_v61 = vmul.f32 %v2464_v37, %v3937_v38  ;;  %3490 = vmatprep.subr.bf16.mxu1 %v5604_v10  ;;  %v3491_v44 = vpack.c.bf16 %v2590_v9, %v2589_v14  ;;  %v2575_v45 = vmul.f32 %v5329_v43, %v5055_v31 }
 0x7b1   :  { %v2424_v1 = vpop.permute.xlu1 %2423 }
 0x7b2   :  { %v5338_v50 = vadd.f32 %v2480_v61, %v2364_v25  ;;  %v2465_v57 = vmul.f32 %v5249_v35, %v2424_v1  ;;  %v2591_v28 = vadd.f32 %v2575_v45, %v5111_v5  ;;  %v2367_v5 = vmul.f32 %v5162_v7, %v3922_v12  ;;  %v5655_v1 = vld [vmem:[#allocation16_spill] sm:$0xff] }
 0x7b3   :  { %3492 = vmatpush3.bf16.msra.mxu1 %v3491_v44 }
 0x7b4   :  { %v2481_v17 = vmul.f32 %v2465_v57, %v3937_v38  ;;  %3493 = vmatprep.subr.bf16.mxu1 %v5604_v10  ;;  %v2576_v8 = vmul.f32 %v5338_v50, %v5092_v41 }
 0x7b5   :  { %v2429_v47 = vpop.permute.xlu1 %2428 }
 0x7b6   :  { %v5349_v54 = vadd.f32 %v2481_v17, %v2365_v48  ;;  %v2466_v27 = vmul.f32 %v5249_v35, %v2429_v47  ;;  %v2592_v31 = vadd.f32 %v2576_v8, %v5116_v55 }
 0x7b8   :  { %v2482_v26 = vmul.f32 %v2466_v27, %v3937_v38  ;;  %v3494_v3 = vpack.c.bf16 %v2592_v31, %v2591_v28  ;;  %v2577_v6 = vmul.f32 %v5349_v54, %v5131_v60  ;;  %v2368_v60 = vmul.f32 %v5181_v32, %v3922_v12 }
 0x7b9   :  { %v2434_v42 = vpop.permute.xlu1 %2433 }
 0x7ba   :  { %v5357_v19 = vadd.f32 %v2482_v26, %v2366_v0  ;;  %v2467_v41 = vmul.f32 %v5249_v35, %v2434_v42  ;;  %3495 = vmatpush3.bf16.msra.mxu1 %v3494_v3  ;;  %v2593_v20 = vadd.f32 %v2577_v6, %v5150_v22  ;;  %v2369_v22 = vmul.f32 %v5202_v11, %v3922_v12 }
 0x7bb   :  { %3496 = vmatprep.subr.bf16.mxu1 %v5604_v10 }
 0x7bc   :  { %v2483_v55 = vmul.f32 %v2467_v41, %v3937_v38  ;;  %v2578_v15 = vmul.f32 %v5357_v19, %v5139_v46 }
 0x7bd   :  { %v2439_v2 = vpop.permute.xlu1 %2438 }
 0x7be   :  { %v5368_v51 = vadd.f32 %v2483_v55, %v2367_v5  ;;  %v2468_v23 = vmul.f32 %v5249_v35, %v2439_v2  ;;  %v2594_v21 = vadd.f32 %v2578_v15, %v5155_v18 }
 0x7c0   :  { %v2484_v33 = vmul.f32 %v2468_v23, %v3937_v38  ;;  %v3497_v7 = vpack.c.bf16 %v2594_v21, %v2593_v20  ;;  %v2579_v49 = vmul.f32 %v5368_v51, %v5171_v29  ;;  %v2370_v29 = vmul.f32 %v5221_v30, %v3922_v12  ;;  %v5658_v30 = vld [vmem:[#allocation7_spill] sm:$0xff]  ;;  %v2896_v20 = vld [vmem:[%s5543_s1 + $0x7] sm:$0x1]  ;;  %s3530_s1 = scalar_lea.vmem %s5408_s18, 128 }
 0x7c1   :  { %v2444_v13 = vpop.permute.xlu1 %2443  ;;  %p3531_p0 = scmp.ne.s32.totalorder %s5408_s18, %s3530_s1  ;;  %p3536_p2 = scmp.lt.s32.totalorder %s3530_s1, %s3530_s1 }
 0x7c2   :  { %v5376_v52 = vadd.f32 %v2484_v33, %v2368_v60  ;;  %v2469_v46 = vmul.f32 %v5249_v35, %v2444_v13  ;;  %3498 = vmatpush3.bf16.msra.mxu1 %v3497_v7  ;;  %v2595_v9 = vadd.f32 %v2579_v49, %v5190_v40  ;;  %v5656_v40 = vld [vmem:[#allocation8_spill] sm:$0xff] }
 0x7c3   :  { %3499 = vmatprep.subr.bf16.mxu1 %v5604_v10  ;;  %p3537_p3 = por %p3536_p2, %p3535_p1 }
 0x7c4   :  { %v2485_v18 = vmul.f32 %v2469_v46, %v3937_v38  ;;  %v2580_v32 = vmul.f32 %v5376_v52, %v5179_v63 }
 0x7c5   :  { %v2449_v36 = vpop.permute.xlu1 %2448  ;;  %p3538_p4 = pnand %p3537_p3, %p3531_p0 }
 0x7c6   :  { %v5387_v37 = vadd.f32 %v2485_v18, %v2369_v22  ;;  %v2470_v14 = vmul.f32 %v5249_v35, %v2449_v36  ;;  %v2596_v25 = vadd.f32 %v2580_v32, %v5195_v39  ;;  %v5657_v39 = vld [vmem:[#allocation6_spill] sm:$0xff]  ;;  %v2706_v18 = vmul.f32 %v5278_v59, %v3922_v12 }
 0x7c7   :  { %v2707_v32 = vmul.f32 %v5280_v34, %v3922_v12  ;;  %v2708_v36 = vmul.f32 %v5282_v16, %v3922_v12  ;;  %v2711_v59 = vmul.f32 %v5295_v53, %v3922_v12  ;;  %v2712_v34 = vmul.f32 %v5309_v4, %v3922_v12 }
 0x7c8   :  { %v2486_v61 = vmul.f32 %v2470_v14, %v3937_v38  ;;  %v3500_v11 = vpack.c.bf16 %v2596_v25, %v2595_v9  ;;  %v2581_v63 = vmul.f32 %v5387_v37, %v5211_v62  ;;  %v2709_v14 = vmul.f32 %v5273_v24, %v3922_v12  ;;  %v5659_v9 = vld [vmem:[#allocation15_spill] sm:$0xff] }
 0x7c9   :  { %v2713_v16 = vmul.f32 %v5318_v56, %v3922_v12 }
 0x7ca   :  { %v5395_v44 = vadd.f32 %v2486_v61, %v2370_v29  ;;  %3501 = vmatpush3.bf16.msra.mxu1 %v3500_v11  ;;  %v2597_v57 = vadd.f32 %v2581_v63, %v5656_v40  ;;  %v2710_v29 = vmul.f32 %v5275_v58, %v3922_v12 }
 0x7cb   :  { %3502 = vmatprep.subr.bf16.mxu1 %v5604_v10 }
 0x7cc   :  { %v2582_v35 = vmul.f32 %v5395_v44, %v5655_v1 }
 0x7ce   :  { %v2598_v45 = vadd.f32 %v2582_v35, %v5657_v39 }
 0x7d0   :  { %v3503_v48 = vpack.c.bf16 %v2598_v45, %v2597_v57 }
 0x7d2   :  { %3504 = vmatpush3.bf16.msra.mxu1 %v3503_v48 }
 0x7d5   :  { %3311 = vmatmul.mubr.f32.vlgmr.msra.gmra.mrb[6].mxu1 %v5658_v30 }
 0x818   :  { %v2690_v17 = vpop.trf.xlu1 }
 0x819   :  { %2724 = vperm.xlu1 %3513, %v2690_v17  }
 0x81c   :  { %v2691_v8 = vpop.trf.xlu1 }
 0x81d   :  { %2729 = vperm.xlu0 %3512, %v2691_v8  }
 0x820   :  { %v2692_v47 = vpop.trf.xlu1 }
 0x821   :  { %2734 = vperm.xlu0 %3512, %v2692_v47  }
 0x824   :  { %v2693_v62 = vpop.trf.xlu1 }
 0x825   :  { %2739 = vperm.xlu0 %3512, %v2693_v62  }
 0x828   :  { %v2694_v10 = vpop.trf.xlu1 }
 0x829   :  { %2744 = vperm.xlu0 %3512, %v2694_v10  }
 0x82c   :  { %v2695_v27 = vpop.trf.xlu1 }
 0x82d   :  { %2749 = vperm.xlu0 %3512, %v2695_v27  }
 0x830   :  { %v2696_v28 = vpop.trf.xlu1 }
 0x831   :  { %2754 = vperm.xlu0 %3512, %v2696_v28  }
 0x834   :  { %v2697_v31 = vpop.trf.xlu1 }
 0x835   :  { %2759 = vperm.xlu0 %3512, %v2697_v31  }
 0x838   :  { %v2698_v0 = vpop.trf.xlu1 }
 0x839   :  { %2764 = vperm.xlu0 %3512, %v2698_v0  }
 0x83c   :  { %v2699_v26 = vpop.trf.xlu1 }
 0x83d   :  { %2769 = vperm.xlu0 %3512, %v2699_v26  }
 0x840   :  { %v2700_v3 = vpop.trf.xlu1 }
 0x841   :  { %2774 = vperm.xlu0 %3512, %v2700_v3  }
 0x844   :  { %v2701_v42 = vpop.trf.xlu1 }
 0x845   :  { %2779 = vperm.xlu0 %3512, %v2701_v42  }
 0x848   :  { %v2702_v41 = vpop.trf.xlu1 }
 0x849   :  { %2784 = vperm.xlu0 %3512, %v2702_v41  }
 0x84c   :  { %v2703_v6 = vpop.trf.xlu1 }
 0x84d   :  { %2789 = vperm.xlu0 %3512, %v2703_v6  }
 0x850   :  { %v2704_v5 = vpop.trf.xlu1 }
 0x851   :  { %2794 = vperm.xlu0 %3512, %v2704_v5  }
 0x854   :  { %v2705_v55 = vpop.trf.xlu1 }
 0x855   :  { %2799 = vperm.xlu0 %3512, %v2705_v55  }
 0x898   :  { %v2725_v61 = vpop.permute.xlu1 %2724 }
 0x89c   :  { %v2730_v15 = vpop.permute.xlu0 %2729 }
 0x8a0   :  { %v2735_v2 = vpop.permute.xlu0 %2734 }
 0x8a4   :  { %v2740_v23 = vpop.permute.xlu0 %2739 }
 0x8a8   :  { %v2745_v21 = vpop.permute.xlu0 %2744  ;;  %v2667_v60 = vpop.f32.mrb[6].mxu1 }
 0x8a9   :  { %v2668_v33 = vadd.f32 %v2896_v20, %v2667_v60  ;;  %v3312_v7 = vpop.f32.mrb[7].mxu1 }
 0x8ab   :  { %3528 = vtanh.f32 %v2668_v33 }
 0x8ac   :  { %v2750_v13 = vpop.permute.xlu0 %2749 }
 0x8b0   :  { %v2755_v46 = vpop.permute.xlu0 %2754 }
 0x8b4   :  { %v2760_v49 = vpop.permute.xlu0 %2759 }
 0x8b5   :  { %v3529_v22 = vpop.eup %3528 }
 0x8b6   :  { %2673 = vst [vmem:[#allocation3 + $0x7] sm:$0x1] %v3529_v22  ;;  %v5419_v25 = vrot.slane %v3529_v22, %v5659_v9 }
 0x8b7   :  { %3541 = shalt.err (!%p3538_p4)
}
 0x8b8   :  { %s3542_s21 = scalar_lea.hbm %s5548_s6, 128 }
 0x8b9   :  { %p3543_p5 = scmp.ne.s32.totalorder %s5548_s6, %s3542_s21  ;;  %p3546_p6 = scmp.lt.u32.totalorder %s3542_s21, %s5548_s6 }
 0x8bb   :  { %p3548_p7 = pnand %p3546_p6, %p3543_p5 }
 0x8bd   :  { %3551 = shalt.err (!%p3548_p7)
}
 0x8be   :  { %s3559_s25 = smov 16   ;;  %s3560_s26 = smov 1   ;;  %v2806_v24 = vmul.f32 %v5419_v25, %v2725_v61  ;;  %v2807_v58 = vmul.f32 %v5419_v25, %v2730_v15  ;;  %v2808_v53 = vmul.f32 %v5419_v25, %v2735_v2  ;;  %v2809_v4 = vmul.f32 %v5419_v25, %v2740_v23  ;;  %v2765_v56 = vpop.permute.xlu0 %2764 }
 0x8bf   :  { %2881 = dma.vmem_to_hbm [thread:$0]  %s5408_s18, 128, %s5548_s6, [#allocation4], %s3559_s25, %s3559_s25, %s3560_s26   ;;  %v2810_v11 = vmul.f32 %v5419_v25, %v2745_v21  ;;  %v2811_v63 = vmul.f32 %v5419_v25, %v2750_v13  ;;  %v2812_v1 = vmul.f32 %v5419_v25, %v2755_v46  ;;  %v2813_v35 = vmul.f32 %v5419_v25, %v2760_v49 }
 0x8c0   :  { %v2822_v40 = vmul.f32 %v2806_v24, %v3937_v38  ;;  %v2823_v57 = vmul.f32 %v2807_v58, %v3937_v38  ;;  %v2824_v39 = vmul.f32 %v2808_v53, %v3937_v38  ;;  %v2825_v45 = vmul.f32 %v2809_v4, %v3937_v38 }
 0x8c1   :  { %v2826_v48 = vmul.f32 %v2810_v11, %v3937_v38  ;;  %v2827_v30 = vmul.f32 %v2811_v63, %v3937_v38  ;;  %v2828_v17 = vmul.f32 %v2812_v1, %v3937_v38  ;;  %v2829_v8 = vmul.f32 %v2813_v35, %v3937_v38 }
 0x8c2   :  { %v2838_v47 = vadd.f32 %v2822_v40, %v2706_v18  ;;  %v2839_v62 = vadd.f32 %v2823_v57, %v2707_v32  ;;  %v2840_v10 = vadd.f32 %v2824_v39, %v2708_v36  ;;  %v2841_v27 = vadd.f32 %v2825_v45, %v2709_v14  ;;  %v2770_v28 = vpop.permute.xlu0 %2769 }
 0x8c3   :  { %v2842_v31 = vadd.f32 %v2826_v48, %v2710_v29  ;;  %v2843_v0 = vadd.f32 %v2827_v30, %v2711_v59  ;;  %v2844_v26 = vadd.f32 %v2828_v17, %v2712_v34  ;;  %v2845_v3 = vadd.f32 %v2829_v8, %v2713_v16 }
 0x8c4   :  { %2854 = vst [vmem:[%s5549_s7] sm:$0xff] %v2838_v47  ;;  %2855 = vst [vmem:[%s5549_s7 + $0x8] sm:$0xff] %v2839_v62  ;;  %v2814_v42 = vmul.f32 %v5419_v25, %v2765_v56  ;;  %v2815_v41 = vmul.f32 %v5419_v25, %v2770_v28  ;;  %v2714_v6 = vmul.f32 %v5329_v43, %v3922_v12 }
 0x8c5   :  { %2856 = vst [vmem:[%s5549_s7 + $0x10] sm:$0xff] %v2840_v10  ;;  %2857 = vst [vmem:[%s5549_s7 + $0x18] sm:$0xff] %v2841_v27  ;;  %v2715_v55 = vmul.f32 %v5338_v50, %v3922_v12  ;;  %v2716_v60 = vmul.f32 %v5349_v54, %v3922_v12  ;;  %v2717_v54 = vmul.f32 %v5357_v19, %v3922_v12 }
 0x8c6   :  { %2858 = vst [vmem:[%s5549_s7 + $0x20] sm:$0xff] %v2842_v31  ;;  %2859 = vst [vmem:[%s5549_s7 + $0x28] sm:$0xff] %v2843_v0  ;;  %v2830_v5 = vmul.f32 %v2814_v42, %v3937_v38  ;;  %v2831_v15 = vmul.f32 %v2815_v41, %v3937_v38  ;;  %v2775_v2 = vpop.permute.xlu0 %2774  ;;  %v2718_v18 = vmul.f32 %v5368_v51, %v3922_v12 }
 0x8c7   :  { %2860 = vst [vmem:[%s5549_s7 + $0x30] sm:$0xff] %v2844_v26  ;;  %2861 = vst [vmem:[%s5549_s7 + $0x38] sm:$0xff] %v2845_v3  ;;  %v2816_v23 = vmul.f32 %v5419_v25, %v2775_v2  ;;  %v2719_v19 = vmul.f32 %v5376_v52, %v3922_v12  ;;  %v2720_v51 = vmul.f32 %v5387_v37, %v3922_v12 }
 0x8c8   :  { %v2846_v20 = vadd.f32 %v2830_v5, %v2714_v6  ;;  %v2847_v21 = vadd.f32 %v2831_v15, %v2715_v55  ;;  %v2721_v52 = vmul.f32 %v5395_v44, %v3922_v12 }
 0x8c9   :  { %v2832_v33 = vmul.f32 %v2816_v23, %v3937_v38 }
 0x8ca   :  { %2862 = vst [vmem:[%s5549_s7 + $0x40] sm:$0xff] %v2846_v20  ;;  %2863 = vst [vmem:[%s5549_s7 + $0x48] sm:$0xff] %v2847_v21  ;;  %v2780_v43 = vpop.permute.xlu0 %2779 }
 0x8cb   :  { %v2848_v50 = vadd.f32 %v2832_v33, %v2716_v60  ;;  %v2817_v7 = vmul.f32 %v5419_v25, %v2780_v43 }
 0x8cd   :  { %2864 = vst [vmem:[%s5549_s7 + $0x50] sm:$0xff] %v2848_v50  ;;  %v2833_v13 = vmul.f32 %v2817_v7, %v3937_v38 }
 0x8ce   :  { %v2785_v46 = vpop.permute.xlu0 %2784 }
 0x8cf   :  { %v2849_v49 = vadd.f32 %v2833_v13, %v2717_v54  ;;  %v2818_v22 = vmul.f32 %v5419_v25, %v2785_v46 }
 0x8d1   :  { %2865 = vst [vmem:[%s5549_s7 + $0x58] sm:$0xff] %v2849_v49  ;;  %v2834_v32 = vmul.f32 %v2818_v22, %v3937_v38 }
 0x8d2   :  { %v2790_v36 = vpop.permute.xlu0 %2789 }
 0x8d3   :  { %v2850_v14 = vadd.f32 %v2834_v32, %v2718_v18  ;;  %v2819_v9 = vmul.f32 %v5419_v25, %v2790_v36 }
 0x8d5   :  { %2866 = vst [vmem:[%s5549_s7 + $0x60] sm:$0xff] %v2850_v14  ;;  %v2835_v29 = vmul.f32 %v2819_v9, %v3937_v38 }
 0x8d6   :  { %v2795_v61 = vpop.permute.xlu0 %2794 }
 0x8d7   :  { %v2851_v59 = vadd.f32 %v2835_v29, %v2719_v19  ;;  %v2820_v34 = vmul.f32 %v5419_v25, %v2795_v61 }
 0x8d9   :  { %2867 = vst [vmem:[%s5549_s7 + $0x68] sm:$0xff] %v2851_v59  ;;  %v2836_v16 = vmul.f32 %v2820_v34, %v3937_v38 }
 0x8da   :  { %v2800_v24 = vpop.permute.xlu0 %2799 }
 0x8db   :  { %v2852_v58 = vadd.f32 %v2836_v16, %v2720_v51  ;;  %v2821_v53 = vmul.f32 %v5419_v25, %v2800_v24 }
 0x8dd   :  { %2868 = vst [vmem:[%s5549_s7 + $0x70] sm:$0xff] %v2852_v58  ;;  %v2837_v4 = vmul.f32 %v2821_v53, %v3937_v38 }
 0x8df   :  { %v2853_v56 = vadd.f32 %v2837_v4, %v2721_v52 }
 0x8e1   :  { %2869 = vst [vmem:[%s5549_s7 + $0x78] sm:$0xff] %v2853_v56 }
 0x8e2   :  { %3552 = dma.done.wait [#allocation4], 128  }
 0x8e3   :  { %3553 = vsyncadd [#allocation4], 4294967168 }
 0x8e4   :  { %2889 = vsyncpa [#allocation4], 1 }

</bundles_post_ra>
